<compile_context>
chip_gen: v5e
topology: v5e:2x2
jax: 0.10.0
libtpu: 0.0.40
codegen_flags: <defaults>
</compile_context>

<pallas_src>
import functools

import jax
import jax.numpy as jnp
from jax.experimental import pallas as pl
from jax.experimental.pallas import tpu as pltpu


def decoder_kernel(x_ref, wih1_ref, whh1_ref, b1_ref,
                   w2_ref, b2_ref, wout_row_ref, bout_ref,
                   out_ref):
    B, seq_len = out_ref.shape
    H1 = whh1_ref.shape[0]
    H2 = w2_ref.shape[1] // 4

    # ---- weights / constants hoisted out of the fully-unrolled loop ----
    whh1 = whh1_ref[...]                      # (H1, 4*H1)   f32  (4 vregs)
    w2 = w2_ref[...]                          # (H1+H2, 4*H2) bf16 (12 vregs)
    b2 = b2_ref[...]                          # (1, 4*H2)
    wout_row = wout_row_ref[...]              # (1, H2)
    bout = bout_ref[...]                      # (1, 1)

    def act_consts(H):
        # Lane-affine turning one full-width tanh into sigmoid on the
        # (i, f, o) lanes and identity (tanh) on the g lanes.
        lane = jax.lax.broadcasted_iota(jnp.int32, (1, 4 * H), 1)
        is_sig = lane < 3 * H
        alpha = jnp.where(is_sig, 0.5, 1.0).astype(jnp.float32)
        beta = jnp.where(is_sig, 0.5, 0.0).astype(jnp.float32)
        return alpha, beta

    alpha1, beta1 = act_consts(H1)
    alpha2, beta2 = act_consts(H2)

    def lstm_cell(pre, c, alpha, beta, H):
        # The i/f/o columns of the weights & biases were pre-scaled by 0.5
        # host-side, so sigmoid(z) = 0.5*tanh(0.5*z)+0.5 needs only this single
        # full-width tanh plus a cheap VPU affine.
        t = jnp.tanh(pre)                     # one EUP push over (B, 4H)
        act = t * alpha + beta
        i = act[:, 0 * H:1 * H]
        f = act[:, 1 * H:2 * H]
        o = act[:, 2 * H:3 * H]
        g = act[:, 3 * H:4 * H]
        c_new = f * c + i * g
        h_new = o * jnp.tanh(c_new)
        return h_new, c_new

    x = x_ref[...]                            # (B, D), D == H1

    # rnn1 input projection is identical at every step (input is repeated).
    ix1 = (jnp.dot(x, wih1_ref[...], preferred_element_type=jnp.float32)
           + b1_ref[...])                     # (B, 4*H1)

    h1 = jnp.zeros((B, H1), jnp.float32)
    c1 = jnp.zeros((B, H1), jnp.float32)
    h2 = jnp.zeros((B, H2), jnp.float32)
    c2 = jnp.zeros((B, H2), jnp.float32)

    outs = []
    # seq_len is static and tiny -> fully unroll so the scheduler sees the
    # whole latency chain and can overlap layer-1(t+1) with layer-2(t).
    for _ in range(seq_len):
        # ---- LSTM layer 1 ----
        pre1 = ix1 + jnp.dot(h1, whh1, preferred_element_type=jnp.float32)
        h1, c1 = lstm_cell(pre1, c1, alpha1, beta1, H1)
        # ---- LSTM layer 2 (fused input+recurrent dot, bf16 weights) ----
        lhs2 = jnp.concatenate([h1, h2], axis=-1).astype(w2.dtype)  # (B, H1+H2)
        pre2 = b2 + jnp.dot(lhs2, w2, preferred_element_type=jnp.float32)
        h2, c2 = lstm_cell(pre2, c2, alpha2, beta2, H2)
        # Output projection: n_features == 1, so a VPU multiply + XLU lane
        # reduce (off the recurrence chain) replaces an N=1 MXU matmul.
        outs.append(jnp.sum(h2 * wout_row, axis=-1, keepdims=True))  # (B, 1)

    out = jnp.concatenate(outs, axis=-1) + bout      # (B, seq_len), lane-dense
    out_ref[...] = out.astype(out_ref.dtype)


def _regroup_and_prescale_gates(w, H):
    """Permute the last axis from PyTorch gate order (i, f, g, o) to
    (i, f, o, g) and fold the sigmoid identity's 0.5 pre-scale into the
    i/f/o columns (exact: power-of-two scaling)."""
    i = w[..., 0 * H:1 * H]
    f = w[..., 1 * H:2 * H]
    g = w[..., 2 * H:3 * H]
    o = w[..., 3 * H:4 * H]
    return jnp.concatenate([0.5 * i, 0.5 * f, 0.5 * o, g], axis=-1)


def pack_params_for_kernel(params):
    """Host-side (traced, outside the kernel) weight re-layout:
       - gate blocks regrouped to (i, f, o, g) with i/f/o pre-scaled by 0.5
       - layer-2 input & recurrent weights fused into one bf16 matrix
       - output weight transposed to row layout (n_features, H2)."""
    (wih1, whh1, b1, wih2, whh2, b2, wout, bout) = params
    H1 = whh1.shape[0]
    H2 = whh2.shape[0]
    wih1_k = _regroup_and_prescale_gates(wih1, H1)
    whh1_k = _regroup_and_prescale_gates(whh1, H1)
    b1_k = _regroup_and_prescale_gates(b1, H1)
    w2_k = jnp.concatenate([_regroup_and_prescale_gates(wih2, H2),
                            _regroup_and_prescale_gates(whh2, H2)],
                           axis=0).astype(jnp.bfloat16)          # (H1+H2, 4*H2)
    b2_k = _regroup_and_prescale_gates(b2, H2)
    wout_row = wout.T                                            # (n_features, H2)
    return (wih1_k, whh1_k, b1_k, w2_k, b2_k, wout_row, bout)


def decoder_forward(x, params, seq_len):
    wout = params[6]
    n_features = wout.shape[1]
    # The PyTorch module's reshape only makes sense for n_features == 1; the
    # kernel's lane-reduction output projection relies on it too.
    assert n_features == 1, "Decoder semantics require n_features == 1"
    B, D = x.shape                      # module usage: B == n_features == 1
    H1 = D
    H2 = 2 * D
    kparams = pack_params_for_kernel(params)
    vmem = pl.BlockSpec(memory_space=pltpu.MemorySpace.VMEM)

    flops = (2 * B * D * 4 * H1                           # ix1 (computed once)
             + 2 * seq_len * B * (H1 * 4 * H1             # h1 @ whh1
                                  + (H1 + H2) * 4 * H2    # [h1,h2] @ w2
                                  + H2))                  # output lane-reduce
    transcendentals = seq_len * B * (4 * H1 + H1 + 4 * H2 + H2)
    bytes_accessed = (x.size * 4
                      + sum(int(p.size) * p.dtype.itemsize for p in kparams)
                      + B * seq_len * 4)

    out = pl.pallas_call(
        decoder_kernel,
        out_shape=jax.ShapeDtypeStruct((B, seq_len), jnp.float32),
        in_specs=[vmem] * 8,
        out_specs=vmem,
        cost_estimate=pl.CostEstimate(flops=flops,
                                      transcendentals=transcendentals,
                                      bytes_accessed=bytes_accessed),
    )(x, *kparams)
    # Lane-dense (B, seq_len) kernel output -> module layout (seq_len, n_features).
    return out.reshape(seq_len, n_features)


def init_params(key, input_dim, n_features):
    """Deterministic synthetic weights matching PyTorch parameter shapes
    (weight_ih/hh stored transposed for row-vector @ matrix kernels,
     gate order i,f,g,o like PyTorch)."""
    H1 = input_dim
    H2 = 2 * input_dim
    keys = jax.random.split(key, 10)

    def u(k, shape, scale):
        return jax.random.uniform(k, shape, jnp.float32, -scale, scale)

    s1 = 1.0 / jnp.sqrt(H1)
    s2 = 1.0 / jnp.sqrt(H2)
    # rnn1: LSTM(input_dim -> input_dim)
    wih1 = u(keys[0], (input_dim, 4 * H1), s1)                       # weight_ih_l0.T
    whh1 = u(keys[1], (H1, 4 * H1), s1)                              # weight_hh_l0.T
    b1 = u(keys[2], (1, 4 * H1), s1) + u(keys[3], (1, 4 * H1), s1)   # b_ih + b_hh
    # rnn2: LSTM(input_dim -> 2*input_dim)
    wih2 = u(keys[4], (H1, 4 * H2), s2)
    whh2 = u(keys[5], (H2, 4 * H2), s2)
    b2 = u(keys[6], (1, 4 * H2), s2) + u(keys[7], (1, 4 * H2), s2)
    # output_layer: Linear(2*input_dim -> n_features)
    wout = u(keys[8], (H2, n_features), s2)
    bout = u(keys[9], (1, n_features), s2)
    return (wih1, whh1, b1, wih2, whh2, b2, wout, bout)


def decoder_reference(x, params, seq_len):
    """Pure-JAX reference with PyTorch gate order / layout (sanity check)."""
    (wih1, whh1, b1, wih2, whh2, b2, wout, bout) = params
    H1 = whh1.shape[0]
    H2 = whh2.shape[0]

    def gates(pre):
        H = pre.shape[-1] // 4
        return (jax.nn.sigmoid(pre[:, :H]), jax.nn.sigmoid(pre[:, H:2 * H]),
                jnp.tanh(pre[:, 2 * H:3 * H]), jax.nn.sigmoid(pre[:, 3 * H:]))

    ix1 = x @ wih1 + b1
    h1 = jnp.zeros((1, H1)); c1 = jnp.zeros((1, H1))
    h2 = jnp.zeros((1, H2)); c2 = jnp.zeros((1, H2))
    outs = []
    for _ in range(seq_len):
        i, f, g, o = gates(ix1 + h1 @ whh1)
        c1 = f * c1 + i * g
        h1 = o * jnp.tanh(c1)
        i, f, g, o = gates(h1 @ wih2 + b2 + h2 @ whh2)
        c2 = f * c2 + i * g
        h2 = o * jnp.tanh(c2)
        outs.append(h2)
    h2_all = jnp.concatenate(outs, axis=0)          # (seq_len, H2)
    return h2_all @ wout + bout                     # (seq_len, n_features)


if __name__ == "__main__":
    seq_len = 8
    input_dim = 32
    n_features = 1

    key = jax.random.PRNGKey(0)
    kx, kp = jax.random.split(key)
    # Decoder input: encoder embedding of shape (n_features, input_dim).
    x = jax.random.normal(kx, (n_features, input_dim), jnp.float32)
    params = init_params(kp, input_dim, n_features)

    run = jax.jit(functools.partial(decoder_forward, seq_len=seq_len))
    out = run(x, params)
    out = jax.block_until_ready(out)

    ref = decoder_reference(x, params, seq_len)
    assert out.shape == (seq_len, n_features)
    # bf16 layer-2 weights + fused-dot summation order give small drift vs the
    # f32 reference; 5e-3 still cleanly separates correct from broken gating.
    assert jnp.allclose(out, ref, atol=5e-3, rtol=5e-3), "mismatch vs reference"
    print("KERNEL_OK")
</pallas_src>

<mosaic_0001>
module attributes {stable_mosaic.version = 11 : i64} {
  func.func @decoder_kernel(%arg0: memref<1x32xf32, #tpu.memory_space<vmem>>, %arg1: memref<32x128xf32, #tpu.memory_space<vmem>>, %arg2: memref<32x128xf32, #tpu.memory_space<vmem>>, %arg3: memref<1x128xf32, #tpu.memory_space<vmem>>, %arg4: memref<96x256xbf16, #tpu.memory_space<vmem>>, %arg5: memref<1x256xf32, #tpu.memory_space<vmem>>, %arg6: memref<1x64xf32, #tpu.memory_space<vmem>>, %arg7: memref<1x1xf32, #tpu.memory_space<vmem>>, %arg8: memref<1x8xf32, #tpu.memory_space<vmem>>) attributes {dimension_semantics = [], scalar_prefetch = 0 : i64, scratch_operands = 0 : i64, tpu.core_type = #tpu.core_type<tc>} {
    %c0 = arith.constant 0 : index
    %c0_0 = arith.constant 0 : index
    %0 = vector.load %arg2[%c0, %c0_0] : memref<32x128xf32, #tpu.memory_space<vmem>>, vector<32x128xf32>
    %c0_1 = arith.constant 0 : index
    %c0_2 = arith.constant 0 : index
    %1 = vector.load %arg4[%c0_1, %c0_2] : memref<96x256xbf16, #tpu.memory_space<vmem>>, vector<96x256xbf16>
    %c0_3 = arith.constant 0 : index
    %c0_4 = arith.constant 0 : index
    %2 = vector.load %arg5[%c0_3, %c0_4] : memref<1x256xf32, #tpu.memory_space<vmem>>, vector<1x256xf32>
    %c0_5 = arith.constant 0 : index
    %c0_6 = arith.constant 0 : index
    %3 = vector.load %arg6[%c0_5, %c0_6] : memref<1x64xf32, #tpu.memory_space<vmem>>, vector<1x64xf32>
    %c0_7 = arith.constant 0 : index
    %c0_8 = arith.constant 0 : index
    %4 = vector.load %arg7[%c0_7, %c0_8] : memref<1x1xf32, #tpu.memory_space<vmem>>, vector<1x1xf32>
    %5 = tpu.iota {dimensions = array<i32: 1>} : vector<1x128xi32>
    %c96_i32 = arith.constant 96 : i32
    %6 = vector.broadcast %c96_i32 : i32 to vector<1x128xi32>
    %7 = arith.cmpi slt, %5, %6 : vector<1x128xi32>
    %cst = arith.constant 5.000000e-01 : f32
    %cst_9 = arith.constant 1.000000e+00 : f32
    %8 = vector.broadcast %cst : f32 to vector<1x128xf32>
    %9 = vector.broadcast %cst_9 : f32 to vector<1x128xf32>
    %10 = arith.select %7, %8, %9 : vector<1x128xi1>, vector<1x128xf32>
    %cst_10 = arith.constant 5.000000e-01 : f32
    %cst_11 = arith.constant 0.000000e+00 : f32
    %11 = vector.broadcast %cst_10 : f32 to vector<1x128xf32>
    %12 = vector.broadcast %cst_11 : f32 to vector<1x128xf32>
    %13 = arith.select %7, %11, %12 : vector<1x128xi1>, vector<1x128xf32>
    %14 = tpu.iota {dimensions = array<i32: 1>} : vector<1x256xi32>
    %c192_i32 = arith.constant 192 : i32
    %15 = vector.broadcast %c192_i32 : i32 to vector<1x256xi32>
    %16 = arith.cmpi slt, %14, %15 : vector<1x256xi32>
    %cst_12 = arith.constant 5.000000e-01 : f32
    %cst_13 = arith.constant 1.000000e+00 : f32
    %17 = vector.broadcast %cst_12 : f32 to vector<1x256xf32>
    %18 = vector.broadcast %cst_13 : f32 to vector<1x256xf32>
    %19 = arith.select %16, %17, %18 : vector<1x256xi1>, vector<1x256xf32>
    %cst_14 = arith.constant 5.000000e-01 : f32
    %cst_15 = arith.constant 0.000000e+00 : f32
    %20 = vector.broadcast %cst_14 : f32 to vector<1x256xf32>
    %21 = vector.broadcast %cst_15 : f32 to vector<1x256xf32>
    %22 = arith.select %16, %20, %21 : vector<1x256xi1>, vector<1x256xf32>
    %c0_16 = arith.constant 0 : index
    %c0_17 = arith.constant 0 : index
    %23 = vector.load %arg0[%c0_16, %c0_17] : memref<1x32xf32, #tpu.memory_space<vmem>>, vector<1x32xf32>
    %c0_18 = arith.constant 0 : index
    %c0_19 = arith.constant 0 : index
    %24 = vector.load %arg1[%c0_18, %c0_19] : memref<32x128xf32, #tpu.memory_space<vmem>>, vector<32x128xf32>
    %cst_20 = arith.constant dense<0.000000e+00> : vector<1x128xf32>
    %25 = tpu.matmul %23, %24, %cst_20 {dimension_numbers = #tpu.dot_dimension_numbers<[1], [0], [0], [1], [0, 0, 1, 1], [], []>} : vector<1x32xf32>, vector<32x128xf32>, vector<1x128xf32> -> vector<1x128xf32>
    %c0_21 = arith.constant 0 : index
    %c0_22 = arith.constant 0 : index
    %26 = vector.load %arg3[%c0_21, %c0_22] : memref<1x128xf32, #tpu.memory_space<vmem>>, vector<1x128xf32>
    %27 = arith.addf %25, %26 : vector<1x128xf32>
    %cst_23 = arith.constant 0.000000e+00 : f32
    %28 = vector.broadcast %cst_23 : f32 to vector<1x32xf32>
    %cst_24 = arith.constant 0.000000e+00 : f32
    %29 = vector.broadcast %cst_24 : f32 to vector<1x32xf32>
    %cst_25 = arith.constant 0.000000e+00 : f32
    %30 = vector.broadcast %cst_25 : f32 to vector<1x64xf32>
    %cst_26 = arith.constant 0.000000e+00 : f32
    %31 = vector.broadcast %cst_26 : f32 to vector<1x64xf32>
    %cst_27 = arith.constant dense<0.000000e+00> : vector<1x128xf32>
    %32 = tpu.matmul %28, %0, %cst_27 {dimension_numbers = #tpu.dot_dimension_numbers<[1], [0], [0], [1], [0, 0, 1, 1], [], []>} : vector<1x32xf32>, vector<32x128xf32>, vector<1x128xf32> -> vector<1x128xf32>
    %33 = arith.addf %27, %32 : vector<1x128xf32>
    %34 = math.tanh %33 : vector<1x128xf32>
    %35 = arith.mulf %34, %10 : vector<1x128xf32>
    %36 = arith.addf %35, %13 : vector<1x128xf32>
    %37 = vector.extract_strided_slice %36 {offsets = [0, 0], sizes = [1, 32], strides = [1, 1]} : vector<1x128xf32> to vector<1x32xf32>
    %38 = vector.extract_strided_slice %36 {offsets = [0, 32], sizes = [1, 32], strides = [1, 1]} : vector<1x128xf32> to vector<1x32xf32>
    %39 = vector.extract_strided_slice %36 {offsets = [0, 64], sizes = [1, 32], strides = [1, 1]} : vector<1x128xf32> to vector<1x32xf32>
    %40 = vector.extract_strided_slice %36 {offsets = [0, 96], sizes = [1, 32], strides = [1, 1]} : vector<1x128xf32> to vector<1x32xf32>
    %41 = arith.mulf %38, %29 : vector<1x32xf32>
    %42 = arith.mulf %37, %40 : vector<1x32xf32>
    %43 = arith.addf %41, %42 : vector<1x32xf32>
    %44 = math.tanh %43 : vector<1x32xf32>
    %45 = arith.mulf %39, %44 : vector<1x32xf32>
    %46 = tpu.concatenate %45, %30 in 1 : vector<1x32xf32>, vector<1x64xf32> -> vector<1x96xf32>
    %47 = arith.truncf %46 : vector<1x96xf32> to vector<1x96xbf16>
    %cst_28 = arith.constant dense<0.000000e+00> : vector<1x256xf32>
    %48 = tpu.matmul %47, %1, %cst_28 {dimension_numbers = #tpu.dot_dimension_numbers<[1], [0], [0], [1], [0, 0, 1, 1], [], []>} : vector<1x96xbf16>, vector<96x256xbf16>, vector<1x256xf32> -> vector<1x256xf32>
    %49 = arith.addf %2, %48 : vector<1x256xf32>
    %50 = math.tanh %49 : vector<1x256xf32>
    %51 = arith.mulf %50, %19 : vector<1x256xf32>
    %52 = arith.addf %51, %22 : vector<1x256xf32>
    %53 = vector.extract_strided_slice %52 {offsets = [0, 0], sizes = [1, 64], strides = [1, 1]} : vector<1x256xf32> to vector<1x64xf32>
    %54 = vector.extract_strided_slice %52 {offsets = [0, 64], sizes = [1, 64], strides = [1, 1]} : vector<1x256xf32> to vector<1x64xf32>
    %55 = vector.extract_strided_slice %52 {offsets = [0, 128], sizes = [1, 64], strides = [1, 1]} : vector<1x256xf32> to vector<1x64xf32>
    %56 = vector.extract_strided_slice %52 {offsets = [0, 192], sizes = [1, 64], strides = [1, 1]} : vector<1x256xf32> to vector<1x64xf32>
    %57 = arith.mulf %54, %31 : vector<1x64xf32>
    %58 = arith.mulf %53, %56 : vector<1x64xf32>
    %59 = arith.addf %57, %58 : vector<1x64xf32>
    %60 = math.tanh %59 : vector<1x64xf32>
    %61 = arith.mulf %55, %60 : vector<1x64xf32>
    %62 = arith.mulf %61, %3 : vector<1x64xf32>
    %cst_29 = arith.constant dense<0.000000e+00> : vector<1xf32>
    %63 = vector.multi_reduction <add>, %62, %cst_29 [1] : vector<1x64xf32> to vector<1xf32>
    %64 = vector.shape_cast %63 : vector<1xf32> to vector<1x1xf32>
    %cst_30 = arith.constant dense<0.000000e+00> : vector<1x128xf32>
    %65 = tpu.matmul %45, %0, %cst_30 {dimension_numbers = #tpu.dot_dimension_numbers<[1], [0], [0], [1], [0, 0, 1, 1], [], []>} : vector<1x32xf32>, vector<32x128xf32>, vector<1x128xf32> -> vector<1x128xf32>
    %66 = arith.addf %27, %65 : vector<1x128xf32>
    %67 = math.tanh %66 : vector<1x128xf32>
    %68 = arith.mulf %67, %10 : vector<1x128xf32>
    %69 = arith.addf %68, %13 : vector<1x128xf32>
    %70 = vector.extract_strided_slice %69 {offsets = [0, 0], sizes = [1, 32], strides = [1, 1]} : vector<1x128xf32> to vector<1x32xf32>
    %71 = vector.extract_strided_slice %69 {offsets = [0, 32], sizes = [1, 32], strides = [1, 1]} : vector<1x128xf32> to vector<1x32xf32>
    %72 = vector.extract_strided_slice %69 {offsets = [0, 64], sizes = [1, 32], strides = [1, 1]} : vector<1x128xf32> to vector<1x32xf32>
    %73 = vector.extract_strided_slice %69 {offsets = [0, 96], sizes = [1, 32], strides = [1, 1]} : vector<1x128xf32> to vector<1x32xf32>
    %74 = arith.mulf %71, %43 : vector<1x32xf32>
    %75 = arith.mulf %70, %73 : vector<1x32xf32>
    %76 = arith.addf %74, %75 : vector<1x32xf32>
    %77 = math.tanh %76 : vector<1x32xf32>
    %78 = arith.mulf %72, %77 : vector<1x32xf32>
    %79 = tpu.concatenate %78, %61 in 1 : vector<1x32xf32>, vector<1x64xf32> -> vector<1x96xf32>
    %80 = arith.truncf %79 : vector<1x96xf32> to vector<1x96xbf16>
    %cst_31 = arith.constant dense<0.000000e+00> : vector<1x256xf32>
    %81 = tpu.matmul %80, %1, %cst_31 {dimension_numbers = #tpu.dot_dimension_numbers<[1], [0], [0], [1], [0, 0, 1, 1], [], []>} : vector<1x96xbf16>, vector<96x256xbf16>, vector<1x256xf32> -> vector<1x256xf32>
    %82 = arith.addf %2, %81 : vector<1x256xf32>
    %83 = math.tanh %82 : vector<1x256xf32>
    %84 = arith.mulf %83, %19 : vector<1x256xf32>
    %85 = arith.addf %84, %22 : vector<1x256xf32>
    %86 = vector.extract_strided_slice %85 {offsets = [0, 0], sizes = [1, 64], strides = [1, 1]} : vector<1x256xf32> to vector<1x64xf32>
    %87 = vector.extract_strided_slice %85 {offsets = [0, 64], sizes = [1, 64], strides = [1, 1]} : vector<1x256xf32> to vector<1x64xf32>
    %88 = vector.extract_strided_slice %85 {offsets = [0, 128], sizes = [1, 64], strides = [1, 1]} : vector<1x256xf32> to vector<1x64xf32>
    %89 = vector.extract_strided_slice %85 {offsets = [0, 192], sizes = [1, 64], strides = [1, 1]} : vector<1x256xf32> to vector<1x64xf32>
    %90 = arith.mulf %87, %59 : vector<1x64xf32>
    %91 = arith.mulf %86, %89 : vector<1x64xf32>
    %92 = arith.addf %90, %91 : vector<1x64xf32>
    %93 = math.tanh %92 : vector<1x64xf32>
    %94 = arith.mulf %88, %93 : vector<1x64xf32>
    %95 = arith.mulf %94, %3 : vector<1x64xf32>
    %cst_32 = arith.constant dense<0.000000e+00> : vector<1xf32>
    %96 = vector.multi_reduction <add>, %95, %cst_32 [1] : vector<1x64xf32> to vector<1xf32>
    %97 = vector.shape_cast %96 : vector<1xf32> to vector<1x1xf32>
    %cst_33 = arith.constant dense<0.000000e+00> : vector<1x128xf32>
    %98 = tpu.matmul %78, %0, %cst_33 {dimension_numbers = #tpu.dot_dimension_numbers<[1], [0], [0], [1], [0, 0, 1, 1], [], []>} : vector<1x32xf32>, vector<32x128xf32>, vector<1x128xf32> -> vector<1x128xf32>
    %99 = arith.addf %27, %98 : vector<1x128xf32>
    %100 = math.tanh %99 : vector<1x128xf32>
    %101 = arith.mulf %100, %10 : vector<1x128xf32>
    %102 = arith.addf %101, %13 : vector<1x128xf32>
    %103 = vector.extract_strided_slice %102 {offsets = [0, 0], sizes = [1, 32], strides = [1, 1]} : vector<1x128xf32> to vector<1x32xf32>
    %104 = vector.extract_strided_slice %102 {offsets = [0, 32], sizes = [1, 32], strides = [1, 1]} : vector<1x128xf32> to vector<1x32xf32>
    %105 = vector.extract_strided_slice %102 {offsets = [0, 64], sizes = [1, 32], strides = [1, 1]} : vector<1x128xf32> to vector<1x32xf32>
    %106 = vector.extract_strided_slice %102 {offsets = [0, 96], sizes = [1, 32], strides = [1, 1]} : vector<1x128xf32> to vector<1x32xf32>
    %107 = arith.mulf %104, %76 : vector<1x32xf32>
    %108 = arith.mulf %103, %106 : vector<1x32xf32>
    %109 = arith.addf %107, %108 : vector<1x32xf32>
    %110 = math.tanh %109 : vector<1x32xf32>
    %111 = arith.mulf %105, %110 : vector<1x32xf32>
    %112 = tpu.concatenate %111, %94 in 1 : vector<1x32xf32>, vector<1x64xf32> -> vector<1x96xf32>
    %113 = arith.truncf %112 : vector<1x96xf32> to vector<1x96xbf16>
    %cst_34 = arith.constant dense<0.000000e+00> : vector<1x256xf32>
    %114 = tpu.matmul %113, %1, %cst_34 {dimension_numbers = #tpu.dot_dimension_numbers<[1], [0], [0], [1], [0, 0, 1, 1], [], []>} : vector<1x96xbf16>, vector<96x256xbf16>, vector<1x256xf32> -> vector<1x256xf32>
    %115 = arith.addf %2, %114 : vector<1x256xf32>
    %116 = math.tanh %115 : vector<1x256xf32>
    %117 = arith.mulf %116, %19 : vector<1x256xf32>
    %118 = arith.addf %117, %22 : vector<1x256xf32>
    %119 = vector.extract_strided_slice %118 {offsets = [0, 0], sizes = [1, 64], strides = [1, 1]} : vector<1x256xf32> to vector<1x64xf32>
    %120 = vector.extract_strided_slice %118 {offsets = [0, 64], sizes = [1, 64], strides = [1, 1]} : vector<1x256xf32> to vector<1x64xf32>
    %121 = vector.extract_strided_slice %118 {offsets = [0, 128], sizes = [1, 64], strides = [1, 1]} : vector<1x256xf32> to vector<1x64xf32>
    %122 = vector.extract_strided_slice %118 {offsets = [0, 192], sizes = [1, 64], strides = [1, 1]} : vector<1x256xf32> to vector<1x64xf32>
    %123 = arith.mulf %120, %92 : vector<1x64xf32>
    %124 = arith.mulf %119, %122 : vector<1x64xf32>
    %125 = arith.addf %123, %124 : vector<1x64xf32>
    %126 = math.tanh %125 : vector<1x64xf32>
    %127 = arith.mulf %121, %126 : vector<1x64xf32>
    %128 = arith.mulf %127, %3 : vector<1x64xf32>
    %cst_35 = arith.constant dense<0.000000e+00> : vector<1xf32>
    %129 = vector.multi_reduction <add>, %128, %cst_35 [1] : vector<1x64xf32> to vector<1xf32>
    %130 = vector.shape_cast %129 : vector<1xf32> to vector<1x1xf32>
    %cst_36 = arith.constant dense<0.000000e+00> : vector<1x128xf32>
    %131 = tpu.matmul %111, %0, %cst_36 {dimension_numbers = #tpu.dot_dimension_numbers<[1], [0], [0], [1], [0, 0, 1, 1], [], []>} : vector<1x32xf32>, vector<32x128xf32>, vector<1x128xf32> -> vector<1x128xf32>
    %132 = arith.addf %27, %131 : vector<1x128xf32>
    %133 = math.tanh %132 : vector<1x128xf32>
    %134 = arith.mulf %133, %10 : vector<1x128xf32>
    %135 = arith.addf %134, %13 : vector<1x128xf32>
    %136 = vector.extract_strided_slice %135 {offsets = [0, 0], sizes = [1, 32], strides = [1, 1]} : vector<1x128xf32> to vector<1x32xf32>
    %137 = vector.extract_strided_slice %135 {offsets = [0, 32], sizes = [1, 32], strides = [1, 1]} : vector<1x128xf32> to vector<1x32xf32>
    %138 = vector.extract_strided_slice %135 {offsets = [0, 64], sizes = [1, 32], strides = [1, 1]} : vector<1x128xf32> to vector<1x32xf32>
    %139 = vector.extract_strided_slice %135 {offsets = [0, 96], sizes = [1, 32], strides = [1, 1]} : vector<1x128xf32> to vector<1x32xf32>
    %140 = arith.mulf %137, %109 : vector<1x32xf32>
    %141 = arith.mulf %136, %139 : vector<1x32xf32>
    %142 = arith.addf %140, %141 : vector<1x32xf32>
    %143 = math.tanh %142 : vector<1x32xf32>
    %144 = arith.mulf %138, %143 : vector<1x32xf32>
    %145 = tpu.concatenate %144, %127 in 1 : vector<1x32xf32>, vector<1x64xf32> -> vector<1x96xf32>
    %146 = arith.truncf %145 : vector<1x96xf32> to vector<1x96xbf16>
    %cst_37 = arith.constant dense<0.000000e+00> : vector<1x256xf32>
    %147 = tpu.matmul %146, %1, %cst_37 {dimension_numbers = #tpu.dot_dimension_numbers<[1], [0], [0], [1], [0, 0, 1, 1], [], []>} : vector<1x96xbf16>, vector<96x256xbf16>, vector<1x256xf32> -> vector<1x256xf32>
    %148 = arith.addf %2, %147 : vector<1x256xf32>
    %149 = math.tanh %148 : vector<1x256xf32>
    %150 = arith.mulf %149, %19 : vector<1x256xf32>
    %151 = arith.addf %150, %22 : vector<1x256xf32>
    %152 = vector.extract_strided_slice %151 {offsets = [0, 0], sizes = [1, 64], strides = [1, 1]} : vector<1x256xf32> to vector<1x64xf32>
    %153 = vector.extract_strided_slice %151 {offsets = [0, 64], sizes = [1, 64], strides = [1, 1]} : vector<1x256xf32> to vector<1x64xf32>
    %154 = vector.extract_strided_slice %151 {offsets = [0, 128], sizes = [1, 64], strides = [1, 1]} : vector<1x256xf32> to vector<1x64xf32>
    %155 = vector.extract_strided_slice %151 {offsets = [0, 192], sizes = [1, 64], strides = [1, 1]} : vector<1x256xf32> to vector<1x64xf32>
    %156 = arith.mulf %153, %125 : vector<1x64xf32>
    %157 = arith.mulf %152, %155 : vector<1x64xf32>
    %158 = arith.addf %156, %157 : vector<1x64xf32>
    %159 = math.tanh %158 : vector<1x64xf32>
    %160 = arith.mulf %154, %159 : vector<1x64xf32>
    %161 = arith.mulf %160, %3 : vector<1x64xf32>
    %cst_38 = arith.constant dense<0.000000e+00> : vector<1xf32>
    %162 = vector.multi_reduction <add>, %161, %cst_38 [1] : vector<1x64xf32> to vector<1xf32>
    %163 = vector.shape_cast %162 : vector<1xf32> to vector<1x1xf32>
    %cst_39 = arith.constant dense<0.000000e+00> : vector<1x128xf32>
    %164 = tpu.matmul %144, %0, %cst_39 {dimension_numbers = #tpu.dot_dimension_numbers<[1], [0], [0], [1], [0, 0, 1, 1], [], []>} : vector<1x32xf32>, vector<32x128xf32>, vector<1x128xf32> -> vector<1x128xf32>
    %165 = arith.addf %27, %164 : vector<1x128xf32>
    %166 = math.tanh %165 : vector<1x128xf32>
    %167 = arith.mulf %166, %10 : vector<1x128xf32>
    %168 = arith.addf %167, %13 : vector<1x128xf32>
    %169 = vector.extract_strided_slice %168 {offsets = [0, 0], sizes = [1, 32], strides = [1, 1]} : vector<1x128xf32> to vector<1x32xf32>
    %170 = vector.extract_strided_slice %168 {offsets = [0, 32], sizes = [1, 32], strides = [1, 1]} : vector<1x128xf32> to vector<1x32xf32>
    %171 = vector.extract_strided_slice %168 {offsets = [0, 64], sizes = [1, 32], strides = [1, 1]} : vector<1x128xf32> to vector<1x32xf32>
    %172 = vector.extract_strided_slice %168 {offsets = [0, 96], sizes = [1, 32], strides = [1, 1]} : vector<1x128xf32> to vector<1x32xf32>
    %173 = arith.mulf %170, %142 : vector<1x32xf32>
    %174 = arith.mulf %169, %172 : vector<1x32xf32>
    %175 = arith.addf %173, %174 : vector<1x32xf32>
    %176 = math.tanh %175 : vector<1x32xf32>
    %177 = arith.mulf %171, %176 : vector<1x32xf32>
    %178 = tpu.concatenate %177, %160 in 1 : vector<1x32xf32>, vector<1x64xf32> -> vector<1x96xf32>
    %179 = arith.truncf %178 : vector<1x96xf32> to vector<1x96xbf16>
    %cst_40 = arith.constant dense<0.000000e+00> : vector<1x256xf32>
    %180 = tpu.matmul %179, %1, %cst_40 {dimension_numbers = #tpu.dot_dimension_numbers<[1], [0], [0], [1], [0, 0, 1, 1], [], []>} : vector<1x96xbf16>, vector<96x256xbf16>, vector<1x256xf32> -> vector<1x256xf32>
    %181 = arith.addf %2, %180 : vector<1x256xf32>
    %182 = math.tanh %181 : vector<1x256xf32>
    %183 = arith.mulf %182, %19 : vector<1x256xf32>
    %184 = arith.addf %183, %22 : vector<1x256xf32>
    %185 = vector.extract_strided_slice %184 {offsets = [0, 0], sizes = [1, 64], strides = [1, 1]} : vector<1x256xf32> to vector<1x64xf32>
    %186 = vector.extract_strided_slice %184 {offsets = [0, 64], sizes = [1, 64], strides = [1, 1]} : vector<1x256xf32> to vector<1x64xf32>
    %187 = vector.extract_strided_slice %184 {offsets = [0, 128], sizes = [1, 64], strides = [1, 1]} : vector<1x256xf32> to vector<1x64xf32>
    %188 = vector.extract_strided_slice %184 {offsets = [0, 192], sizes = [1, 64], strides = [1, 1]} : vector<1x256xf32> to vector<1x64xf32>
    %189 = arith.mulf %186, %158 : vector<1x64xf32>
    %190 = arith.mulf %185, %188 : vector<1x64xf32>
    %191 = arith.addf %189, %190 : vector<1x64xf32>
    %192 = math.tanh %191 : vector<1x64xf32>
    %193 = arith.mulf %187, %192 : vector<1x64xf32>
    %194 = arith.mulf %193, %3 : vector<1x64xf32>
    %cst_41 = arith.constant dense<0.000000e+00> : vector<1xf32>
    %195 = vector.multi_reduction <add>, %194, %cst_41 [1] : vector<1x64xf32> to vector<1xf32>
    %196 = vector.shape_cast %195 : vector<1xf32> to vector<1x1xf32>
    %cst_42 = arith.constant dense<0.000000e+00> : vector<1x128xf32>
    %197 = tpu.matmul %177, %0, %cst_42 {dimension_numbers = #tpu.dot_dimension_numbers<[1], [0], [0], [1], [0, 0, 1, 1], [], []>} : vector<1x32xf32>, vector<32x128xf32>, vector<1x128xf32> -> vector<1x128xf32>
    %198 = arith.addf %27, %197 : vector<1x128xf32>
    %199 = math.tanh %198 : vector<1x128xf32>
    %200 = arith.mulf %199, %10 : vector<1x128xf32>
    %201 = arith.addf %200, %13 : vector<1x128xf32>
    %202 = vector.extract_strided_slice %201 {offsets = [0, 0], sizes = [1, 32], strides = [1, 1]} : vector<1x128xf32> to vector<1x32xf32>
    %203 = vector.extract_strided_slice %201 {offsets = [0, 32], sizes = [1, 32], strides = [1, 1]} : vector<1x128xf32> to vector<1x32xf32>
    %204 = vector.extract_strided_slice %201 {offsets = [0, 64], sizes = [1, 32], strides = [1, 1]} : vector<1x128xf32> to vector<1x32xf32>
    %205 = vector.extract_strided_slice %201 {offsets = [0, 96], sizes = [1, 32], strides = [1, 1]} : vector<1x128xf32> to vector<1x32xf32>
    %206 = arith.mulf %203, %175 : vector<1x32xf32>
    %207 = arith.mulf %202, %205 : vector<1x32xf32>
    %208 = arith.addf %206, %207 : vector<1x32xf32>
    %209 = math.tanh %208 : vector<1x32xf32>
    %210 = arith.mulf %204, %209 : vector<1x32xf32>
    %211 = tpu.concatenate %210, %193 in 1 : vector<1x32xf32>, vector<1x64xf32> -> vector<1x96xf32>
    %212 = arith.truncf %211 : vector<1x96xf32> to vector<1x96xbf16>
    %cst_43 = arith.constant dense<0.000000e+00> : vector<1x256xf32>
    %213 = tpu.matmul %212, %1, %cst_43 {dimension_numbers = #tpu.dot_dimension_numbers<[1], [0], [0], [1], [0, 0, 1, 1], [], []>} : vector<1x96xbf16>, vector<96x256xbf16>, vector<1x256xf32> -> vector<1x256xf32>
    %214 = arith.addf %2, %213 : vector<1x256xf32>
    %215 = math.tanh %214 : vector<1x256xf32>
    %216 = arith.mulf %215, %19 : vector<1x256xf32>
    %217 = arith.addf %216, %22 : vector<1x256xf32>
    %218 = vector.extract_strided_slice %217 {offsets = [0, 0], sizes = [1, 64], strides = [1, 1]} : vector<1x256xf32> to vector<1x64xf32>
    %219 = vector.extract_strided_slice %217 {offsets = [0, 64], sizes = [1, 64], strides = [1, 1]} : vector<1x256xf32> to vector<1x64xf32>
    %220 = vector.extract_strided_slice %217 {offsets = [0, 128], sizes = [1, 64], strides = [1, 1]} : vector<1x256xf32> to vector<1x64xf32>
    %221 = vector.extract_strided_slice %217 {offsets = [0, 192], sizes = [1, 64], strides = [1, 1]} : vector<1x256xf32> to vector<1x64xf32>
    %222 = arith.mulf %219, %191 : vector<1x64xf32>
    %223 = arith.mulf %218, %221 : vector<1x64xf32>
    %224 = arith.addf %222, %223 : vector<1x64xf32>
    %225 = math.tanh %224 : vector<1x64xf32>
    %226 = arith.mulf %220, %225 : vector<1x64xf32>
    %227 = arith.mulf %226, %3 : vector<1x64xf32>
    %cst_44 = arith.constant dense<0.000000e+00> : vector<1xf32>
    %228 = vector.multi_reduction <add>, %227, %cst_44 [1] : vector<1x64xf32> to vector<1xf32>
    %229 = vector.shape_cast %228 : vector<1xf32> to vector<1x1xf32>
    %cst_45 = arith.constant dense<0.000000e+00> : vector<1x128xf32>
    %230 = tpu.matmul %210, %0, %cst_45 {dimension_numbers = #tpu.dot_dimension_numbers<[1], [0], [0], [1], [0, 0, 1, 1], [], []>} : vector<1x32xf32>, vector<32x128xf32>, vector<1x128xf32> -> vector<1x128xf32>
    %231 = arith.addf %27, %230 : vector<1x128xf32>
    %232 = math.tanh %231 : vector<1x128xf32>
    %233 = arith.mulf %232, %10 : vector<1x128xf32>
    %234 = arith.addf %233, %13 : vector<1x128xf32>
    %235 = vector.extract_strided_slice %234 {offsets = [0, 0], sizes = [1, 32], strides = [1, 1]} : vector<1x128xf32> to vector<1x32xf32>
    %236 = vector.extract_strided_slice %234 {offsets = [0, 32], sizes = [1, 32], strides = [1, 1]} : vector<1x128xf32> to vector<1x32xf32>
    %237 = vector.extract_strided_slice %234 {offsets = [0, 64], sizes = [1, 32], strides = [1, 1]} : vector<1x128xf32> to vector<1x32xf32>
    %238 = vector.extract_strided_slice %234 {offsets = [0, 96], sizes = [1, 32], strides = [1, 1]} : vector<1x128xf32> to vector<1x32xf32>
    %239 = arith.mulf %236, %208 : vector<1x32xf32>
    %240 = arith.mulf %235, %238 : vector<1x32xf32>
    %241 = arith.addf %239, %240 : vector<1x32xf32>
    %242 = math.tanh %241 : vector<1x32xf32>
    %243 = arith.mulf %237, %242 : vector<1x32xf32>
    %244 = tpu.concatenate %243, %226 in 1 : vector<1x32xf32>, vector<1x64xf32> -> vector<1x96xf32>
    %245 = arith.truncf %244 : vector<1x96xf32> to vector<1x96xbf16>
    %cst_46 = arith.constant dense<0.000000e+00> : vector<1x256xf32>
    %246 = tpu.matmul %245, %1, %cst_46 {dimension_numbers = #tpu.dot_dimension_numbers<[1], [0], [0], [1], [0, 0, 1, 1], [], []>} : vector<1x96xbf16>, vector<96x256xbf16>, vector<1x256xf32> -> vector<1x256xf32>
    %247 = arith.addf %2, %246 : vector<1x256xf32>
    %248 = math.tanh %247 : vector<1x256xf32>
    %249 = arith.mulf %248, %19 : vector<1x256xf32>
    %250 = arith.addf %249, %22 : vector<1x256xf32>
    %251 = vector.extract_strided_slice %250 {offsets = [0, 0], sizes = [1, 64], strides = [1, 1]} : vector<1x256xf32> to vector<1x64xf32>
    %252 = vector.extract_strided_slice %250 {offsets = [0, 64], sizes = [1, 64], strides = [1, 1]} : vector<1x256xf32> to vector<1x64xf32>
    %253 = vector.extract_strided_slice %250 {offsets = [0, 128], sizes = [1, 64], strides = [1, 1]} : vector<1x256xf32> to vector<1x64xf32>
    %254 = vector.extract_strided_slice %250 {offsets = [0, 192], sizes = [1, 64], strides = [1, 1]} : vector<1x256xf32> to vector<1x64xf32>
    %255 = arith.mulf %252, %224 : vector<1x64xf32>
    %256 = arith.mulf %251, %254 : vector<1x64xf32>
    %257 = arith.addf %255, %256 : vector<1x64xf32>
    %258 = math.tanh %257 : vector<1x64xf32>
    %259 = arith.mulf %253, %258 : vector<1x64xf32>
    %260 = arith.mulf %259, %3 : vector<1x64xf32>
    %cst_47 = arith.constant dense<0.000000e+00> : vector<1xf32>
    %261 = vector.multi_reduction <add>, %260, %cst_47 [1] : vector<1x64xf32> to vector<1xf32>
    %262 = vector.shape_cast %261 : vector<1xf32> to vector<1x1xf32>
    %cst_48 = arith.constant dense<0.000000e+00> : vector<1x128xf32>
    %263 = tpu.matmul %243, %0, %cst_48 {dimension_numbers = #tpu.dot_dimension_numbers<[1], [0], [0], [1], [0, 0, 1, 1], [], []>} : vector<1x32xf32>, vector<32x128xf32>, vector<1x128xf32> -> vector<1x128xf32>
    %264 = arith.addf %27, %263 : vector<1x128xf32>
    %265 = math.tanh %264 : vector<1x128xf32>
    %266 = arith.mulf %265, %10 : vector<1x128xf32>
    %267 = arith.addf %266, %13 : vector<1x128xf32>
    %268 = vector.extract_strided_slice %267 {offsets = [0, 0], sizes = [1, 32], strides = [1, 1]} : vector<1x128xf32> to vector<1x32xf32>
    %269 = vector.extract_strided_slice %267 {offsets = [0, 32], sizes = [1, 32], strides = [1, 1]} : vector<1x128xf32> to vector<1x32xf32>
    %270 = vector.extract_strided_slice %267 {offsets = [0, 64], sizes = [1, 32], strides = [1, 1]} : vector<1x128xf32> to vector<1x32xf32>
    %271 = vector.extract_strided_slice %267 {offsets = [0, 96], sizes = [1, 32], strides = [1, 1]} : vector<1x128xf32> to vector<1x32xf32>
    %272 = arith.mulf %269, %241 : vector<1x32xf32>
    %273 = arith.mulf %268, %271 : vector<1x32xf32>
    %274 = arith.addf %272, %273 : vector<1x32xf32>
    %275 = math.tanh %274 : vector<1x32xf32>
    %276 = arith.mulf %270, %275 : vector<1x32xf32>
    %277 = tpu.concatenate %276, %259 in 1 : vector<1x32xf32>, vector<1x64xf32> -> vector<1x96xf32>
    %278 = arith.truncf %277 : vector<1x96xf32> to vector<1x96xbf16>
    %cst_49 = arith.constant dense<0.000000e+00> : vector<1x256xf32>
    %279 = tpu.matmul %278, %1, %cst_49 {dimension_numbers = #tpu.dot_dimension_numbers<[1], [0], [0], [1], [0, 0, 1, 1], [], []>} : vector<1x96xbf16>, vector<96x256xbf16>, vector<1x256xf32> -> vector<1x256xf32>
    %280 = arith.addf %2, %279 : vector<1x256xf32>
    %281 = math.tanh %280 : vector<1x256xf32>
    %282 = arith.mulf %281, %19 : vector<1x256xf32>
    %283 = arith.addf %282, %22 : vector<1x256xf32>
    %284 = vector.extract_strided_slice %283 {offsets = [0, 0], sizes = [1, 64], strides = [1, 1]} : vector<1x256xf32> to vector<1x64xf32>
    %285 = vector.extract_strided_slice %283 {offsets = [0, 64], sizes = [1, 64], strides = [1, 1]} : vector<1x256xf32> to vector<1x64xf32>
    %286 = vector.extract_strided_slice %283 {offsets = [0, 128], sizes = [1, 64], strides = [1, 1]} : vector<1x256xf32> to vector<1x64xf32>
    %287 = vector.extract_strided_slice %283 {offsets = [0, 192], sizes = [1, 64], strides = [1, 1]} : vector<1x256xf32> to vector<1x64xf32>
    %288 = arith.mulf %285, %257 : vector<1x64xf32>
    %289 = arith.mulf %284, %287 : vector<1x64xf32>
    %290 = arith.addf %288, %289 : vector<1x64xf32>
    %291 = math.tanh %290 : vector<1x64xf32>
    %292 = arith.mulf %286, %291 : vector<1x64xf32>
    %293 = arith.mulf %292, %3 : vector<1x64xf32>
    %cst_50 = arith.constant dense<0.000000e+00> : vector<1xf32>
    %294 = vector.multi_reduction <add>, %293, %cst_50 [1] : vector<1x64xf32> to vector<1xf32>
    %295 = vector.shape_cast %294 : vector<1xf32> to vector<1x1xf32>
    %296 = tpu.concatenate %64, %97, %130, %163, %196, %229, %262, %295 in 1 : vector<1x1xf32>, vector<1x1xf32>, vector<1x1xf32>, vector<1x1xf32>, vector<1x1xf32>, vector<1x1xf32>, vector<1x1xf32>, vector<1x1xf32> -> vector<1x8xf32>
    %297 = vector.broadcast %4 : vector<1x1xf32> to vector<1x8xf32>
    %298 = arith.addf %296, %297 : vector<1x8xf32>
    %c0_51 = arith.constant 0 : index
    %c0_52 = arith.constant 0 : index
    %299 = vector.load %arg8[%c0_51, %c0_52] : memref<1x8xf32, #tpu.memory_space<vmem>>, vector<1x8xf32>
    tpu.vector_store %arg8[%c0_51, %c0_52], %298 {strides = array<i32>} : memref<1x8xf32, #tpu.memory_space<vmem>>, vector<1x8xf32>,
    return
  }
}

</mosaic_0001>

<bundles_post_ra>
// kernel: decoder_forward.1
= control target key start
LH: loop header
LB: loop body
LE: loop exit
PB: predicated region body
PF: predicated region fallthrough
CT: control target
= control target key end

     0   :  { %s1892_s0 = inlined_call_operand.vmem [shape: f32[1,32], index: 0, kind: input, shape index: {}]   ;;  %s1893_s1 = inlined_call_operand.vmem [shape: f32[32,128], index: 1, kind: input, shape index: {}]   ;;  %s1894_s2 = inlined_call_operand.vmem [shape: f32[32,128], index: 2, kind: input, shape index: {}]   ;;  %s1895_s3 = inlined_call_operand.vmem [shape: f32[1,128], index: 3, kind: input, shape index: {}]   ;;  %s1896_s4 = inlined_call_operand.vmem [shape: bf16[96,256], index: 4, kind: input, shape index: {}]   ;;  %s1897_s5 = inlined_call_operand.vmem [shape: f32[1,256], index: 5, kind: input, shape index: {}]   ;;  %s1898_s6 = inlined_call_operand.vmem [shape: f32[1,64], index: 6, kind: input, shape index: {}]   ;;  %s1899_s7 = inlined_call_operand.<no memory space> [shape: f32[1,1], index: 7, kind: input, shape index: {}]   ;;  %s1900_s8 = inlined_call_operand.hbm [shape: f32[1,8], index: 8, kind: output, shape index: {}]  }
   0x1   :  { %v13_v0 = vstv %s1899_s7 }
   0x2   :  { %14 = vst [vmem:[#allocation2] sm:$0x1] %v13_v0 }
   0x3   :  { %v68_v1 = vld [vmem:[%s1893_s1 + $0x18] sm:$0xff]  ;;  %v67_v2 = vld [vmem:[%s1893_s1 + $0x10] sm:$0xff]  ;;  %v52_v3 = vlaneseq  ;;  %v66_v5 = vld [vmem:[%s1893_s1 + $0x8] sm:$0xff] }
   0x4   :  { %86 = vmatpush.msra.mxu2 %v68_v1  ;;  %v1375_v4 = vld [vmem:[%s1894_s2 + $0x18] sm:$0xff]  ;;  %v1384_v6 = vld [vmem:[%s1894_s2 + $0x10] sm:$0xff]  ;;  %v1389_v8 = vld [vmem:[%s1894_s2 + $0x8] sm:$0xff] }
   0x5   :  { %109 = vmatpush.msra.mxu1 %v1375_v4  ;;  %v53_v7 = vand.u32 127, %v52_v3 }
   0x6   :  { %87 = vmatpush.msra.mxu2 %v67_v2 }
   0x7   :  { %15 = vsyncpa [#allocation4], 0  ;;  %v65_v9 = vld [vmem:[%s1893_s1] sm:$0xff]  ;;  %110 = vmatpush.msra.mxu1 %v1384_v6  ;;  %v57_v10 = vadd.s32 128, %v53_v7  ;;  %vm70_vm0 = vcmask 261120   ;;  %v1312_v13 = vmov 1.0  }
   0x8   :  { %88 = vmatpush.msra.mxu2 %v66_v5  ;;  %v64_v11 = vld [vmem:[%s1892_s0] sm:$0x1]  ;;  %v1313_v15 = vmov 0.0   ;;  %vm54_vm2 = vcmp.lt.s32.totalorder %v53_v7, 96  ;;  %v1173_v33 = vld [vmem:[%s1896_s4 + $0x50] sm:$0xf] }
   0x9   :  { %v1401_v12 = vld [vmem:[%s1894_s2] sm:$0xff]  ;;  %111 = vmatpush.msra.mxu1 %v1389_v8  ;;  %vm59_vm1 = vcmp.lt.s32.totalorder %v57_v10, 192  ;;  %v1416_v22 = vsel %vm54_vm2, 0.5, %v1312_v13  ;;  %v1418_v24 = vsel %vm54_vm2, 0.5, %v1313_v15  ;;  %s1314_s2 = smov 32   ;;  %s1315_s7 = smov 64  }
   0xa   :  { %89 = vmatpush.msra.mxu2 %v65_v9  ;;  %v1404_v14 = vsel %vm59_vm1, 0.5, %v1312_v13  ;;  %v1406_v16 = vsel %vm59_vm1, 0.5, %v1313_v15  ;;  %v69_v17 = vld [vmem:[%s1895_s3] sm:$0x1]  ;;  %v1213_v34 = vld [vmem:[%s1896_s4 + $0x54] sm:$0xf0] }
   0xb   :  { %1130 = vmatmul.msk.f32.vlgmr.msra.gmra.mxu2 %vm70_vm0, %v64_v11  ;;  %112 = vmatpush.msra.mxu1 %v1401_v12  ;;  %v1212_v35 = vld [vmem:[%s1896_s4 + $0x54] sm:$0xf]  ;;  %v1442_v36 = vor.u32 %v1213_v34, %v1173_v33  ;;  %v1175_v37 = vld [vmem:[%s1896_s4 + $0x58] sm:$0xf0]  ;;  %v1165_v38 = vld [vmem:[%s1896_s4 + $0x40] sm:$0xf] }
   0xc   :  { %113 = vmatmul.f32.vlgmr.msra.gmra.mxu1 %v1313_v15  ;;  %v1211_v39 = vld [vmem:[%s1896_s4 + $0x44] sm:$0xf0]  ;;  %v1453_v40 = vor.u32 %v1212_v35, %v1175_v37  ;;  %v1210_v41 = vld [vmem:[%s1896_s4 + $0x44] sm:$0xf]  ;;  %v1167_v42 = vld [vmem:[%s1896_s4 + $0x48] sm:$0xf0] }
   0xd   :  { %210 = vmatpush.bf16.msrb.mxu2 %v1442_v36  ;;  %v1462_v43 = vor.u32 %v1211_v39, %v1165_v38  ;;  %338 = vmatpush.bf16.msrb.mxu1 %v1442_v36  ;;  %v1466_v44 = vor.u32 %v1210_v41, %v1167_v42  ;;  %v1157_v45 = vld [vmem:[%s1896_s4 + $0x30] sm:$0xf]  ;;  %v1209_v46 = vld [vmem:[%s1896_s4 + $0x34] sm:$0xf0]  ;;  %v1208_v47 = vld [vmem:[%s1896_s4 + $0x34] sm:$0xf] }
   0xe   :  { %223 = vmatpush.bf16.msra.mxu3 %v1453_v40  ;;  %351 = vmatpush.bf16.msra.mxu0 %v1453_v40  ;;  %v1159_v48 = vld [vmem:[%s1896_s4 + $0x38] sm:$0xf0]  ;;  %v1482_v49 = vor.u32 %v1209_v46, %v1157_v45  ;;  %v1149_v51 = vld [vmem:[%s1896_s4 + $0x20] sm:$0xf]  ;;  %v1207_v52 = vld [vmem:[%s1896_s4 + $0x24] sm:$0xf0] }
   0xf   :  { %v1486_v50 = vor.u32 %v1208_v47, %v1159_v48  ;;  %v1206_v53 = vld [vmem:[%s1896_s4 + $0x24] sm:$0xf]  ;;  %v1151_v54 = vld [vmem:[%s1896_s4 + $0x28] sm:$0xf0]  ;;  %v1502_v55 = vor.u32 %v1207_v52, %v1149_v51  ;;  %v1141_v57 = vld [vmem:[%s1896_s4 + $0x10] sm:$0xf] }
  0x10   :  { %v1506_v56 = vor.u32 %v1206_v53, %v1151_v54  ;;  %v1205_v58 = vld [vmem:[%s1896_s4 + $0x14] sm:$0xf0]  ;;  %v1204_v59 = vld [vmem:[%s1896_s4 + $0x14] sm:$0xf]  ;;  %v1143_v60 = vld [vmem:[%s1896_s4 + $0x18] sm:$0xf0] }
  0x11   :  { %211 = vmatpush.bf16.msrb.mxu2 %v1462_v43  ;;  %339 = vmatpush.bf16.msrb.mxu1 %v1462_v43  ;;  %v1522_v61 = vor.u32 %v1205_v58, %v1141_v57  ;;  %v1526_v62 = vor.u32 %v1204_v59, %v1143_v60  ;;  %v1133_v1 = vld [vmem:[%s1896_s4] sm:$0xf]  ;;  %v1203_v2 = vld [vmem:[%s1896_s4 + $0x4] sm:$0xf0]  ;;  %v1202_v3 = vld [vmem:[%s1896_s4 + $0x4] sm:$0xf] }
  0x12   :  { %224 = vmatpush.bf16.msra.mxu3 %v1466_v44  ;;  %352 = vmatpush.bf16.msra.mxu0 %v1466_v44  ;;  %v1544_v5 = vor.u32 %v1203_v2, %v1133_v1  ;;  %v1135_v7 = vld [vmem:[%s1896_s4 + $0x8] sm:$0xf0]  ;;  %vm204_vm3 = vcmask 785408   ;;  %vm237_vm4 = vcmask 1040384   ;;  %vm275_vm5 = vcmask 516096   ;;  %s1121_s24 = sshll.u32 %s1900_s8, 4  ;;  %s1122_s24 = int_to_ptr.hbm [resolvable:$true] %s1121_s24 }
  0x13   :  { %v1549_v9 = vor.u32 %v1202_v3, %v1135_v7  ;;  %vm1091_vm6 = vcmask 7168   ;;  %vm1093_vm7 = vcmask 15360   ;;  %vm1095_vm8 = vcmask 23552  }
  0x14   :  { %vm1097_vm9 = vcmask 31744   ;;  %vm1099_vm10 = vcmask 39936   ;;  %vm1101_vm11 = vcmask 48128   ;;  %vm1103_vm12 = vcmask 56320  }
  0x15   :  { %212 = vmatpush.bf16.msrb.mxu2 %v1482_v49  ;;  %340 = vmatpush.bf16.msrb.mxu1 %v1482_v49  ;;  %vm1112_vm13 = vcmask 57344  }
  0x16   :  { %225 = vmatpush.bf16.msra.mxu3 %v1486_v50  ;;  %353 = vmatpush.bf16.msra.mxu0 %v1486_v50 }
  0x19   :  { %213 = vmatpush.bf16.msrb.mxu2 %v1502_v55  ;;  %341 = vmatpush.bf16.msrb.mxu1 %v1502_v55 }
  0x1a   :  { %226 = vmatpush.bf16.msra.mxu3 %v1506_v56  ;;  %354 = vmatpush.bf16.msra.mxu0 %v1506_v56 }
  0x1d   :  { %214 = vmatpush.bf16.msrb.mxu2 %v1522_v61  ;;  %342 = vmatpush.bf16.msrb.mxu1 %v1522_v61 }
  0x1e   :  { %227 = vmatpush.bf16.msra.mxu3 %v1526_v62  ;;  %355 = vmatpush.bf16.msra.mxu0 %v1526_v62 }
  0x21   :  { %215 = vmatpush.bf16.msrb.mxu2 %v1544_v5  ;;  %343 = vmatpush.bf16.msrb.mxu1 %v1544_v5 }
  0x22   :  { %228 = vmatpush.bf16.msra.mxu3 %v1549_v9  ;;  %356 = vmatpush.bf16.msra.mxu0 %v1549_v9 }
  0x25   :  { %293 = vmatpush.msra.mxu2 %v1375_v4  ;;  %467 = vmatpush.bf16.msra.mxu1 %v1453_v40 }
  0x26   :  { %454 = vmatpush.bf16.msrb.mxu3 %v1442_v36  ;;  %570 = vmatpush.bf16.msrb.mxu0 %v1442_v36 }
  0x27   :  { %294 = vmatpush.msra.mxu2 %v1384_v6 }
  0x29   :  { %295 = vmatpush.msra.mxu2 %v1389_v8  ;;  %468 = vmatpush.bf16.msra.mxu1 %v1466_v44 }
  0x2a   :  { %455 = vmatpush.bf16.msrb.mxu3 %v1462_v43  ;;  %571 = vmatpush.bf16.msrb.mxu0 %v1462_v43 }
  0x2b   :  { %296 = vmatpush.msra.mxu2 %v1401_v12 }
  0x2d   :  { %469 = vmatpush.bf16.msra.mxu1 %v1486_v50 }
  0x2e   :  { %456 = vmatpush.bf16.msrb.mxu3 %v1482_v49  ;;  %572 = vmatpush.bf16.msrb.mxu0 %v1482_v49 }
  0x31   :  { %470 = vmatpush.bf16.msra.mxu1 %v1506_v56 }
  0x32   :  { %457 = vmatpush.bf16.msrb.mxu3 %v1502_v55  ;;  %573 = vmatpush.bf16.msrb.mxu0 %v1502_v55 }
  0x35   :  { %471 = vmatpush.bf16.msra.mxu1 %v1526_v62 }
  0x36   :  { %458 = vmatpush.bf16.msrb.mxu3 %v1522_v61  ;;  %574 = vmatpush.bf16.msrb.mxu0 %v1522_v61 }
  0x39   :  { %472 = vmatpush.bf16.msra.mxu1 %v1549_v9 }
  0x3a   :  { %459 = vmatpush.bf16.msrb.mxu3 %v1544_v5  ;;  %575 = vmatpush.bf16.msrb.mxu0 %v1544_v5 }
  0x89   :  { %v114_v19 = vpop.f32.mrf.mxu1 }
  0x8e   :  { %v91_v18 = vpop.f32.mrf.mxu2 }
  0x8f   :  { %v1413_v20 = vadd.f32 %v91_v18, %v69_v17  ;;  %v1596_v18 = vld [vmem:[%s1897_s5] sm:$0x3] }
  0x91   :  { %v117_v21 = vadd.f32 %v114_v19, %v1413_v20 }
  0x93   :  { %1222 = vtanh.f32 %v117_v21 }
  0x99   :  { %v1223_v23 = vpop.eup %1222 }
  0x9a   :  { %v119_v25 = vmul.f32 %v1223_v23, %v1416_v22 }
  0x9c   :  { %v1422_v26 = vadd.f32 %v119_v25, %v1418_v24  ;;  %v244_v25 = vrot.slane %v1404_v14, 7 }
  0x9e   :  { %123 = vrot.lane.b32.xlu0 %v1422_v26, %s1314_s2  ;;  %v121_v29 = vmul.f32 0.0, %v1422_v26 }
 0x110   :  { %v124_v27 = vpop.permute.xlu0 %123 }
 0x111   :  { %v126_v28 = vmul.f32 %v124_v27, %v1422_v26 }
 0x113   :  { %128 = vrot.lane.b32.xlu0 %v126_v28, %s1314_s2 }
 0x185   :  { %v129_v30 = vpop.permute.xlu0 %128 }
 0x186   :  { %v1429_v31 = vadd.f32 %v129_v30, %v121_v29  ;;  %v1603_v29 = vsel %vm237_vm4, 0.5, %v244_v25 }
 0x188   :  { %1224 = vtanh.f32 %v1429_v31 }
 0x18e   :  { %v1225_v32 = vpop.eup %1224 }
 0x18f   :  { %134 = vrot.lane.b32.xlu1 %v1225_v32, %s1314_s2 }
 0x201   :  { %v135_v63 = vpop.permute.xlu1 %134 }
 0x202   :  { %v137_v0 = vmul.f32 %v135_v63, %v1422_v26  ;;  %v250_v26 = vrot.slane %v1406_v16, 7 }
 0x204   :  { %139 = vrot.lane.b32.xlu1 %v137_v0, %s1315_s7  ;;  %v1606_v32 = vsel %vm237_vm4, 0.5, %v250_v26 }
 0x276   :  { %v140_v10 = vpop.permute.xlu1 %139 }
 0x277   :  { %v142_v11 = vsel %vm70_vm0, %v140_v10, 0.0 }
 0x278   :  { %v143_v13 = vpack.c.bf16 %v142_v11, %v142_v11 }
 0x27a   :  { %1179 = vmatmul.msk.bf16.vlgmr.msrb.gmra.mxu2 %vm204_vm3, %v143_v13  ;;  %1180 = vmatmul.msk.bf16.vlgmr.msra.gmra.mxu3 %vm204_vm3, %v143_v13 }
 0x27b   :  { %409 = vmatpush.msrb.mxu2 %v1375_v4  ;;  %641 = vmatpush.msra.mxu3 %v1375_v4 }
 0x27d   :  { %410 = vmatpush.msrb.mxu2 %v1384_v6  ;;  %642 = vmatpush.msra.mxu3 %v1384_v6 }
 0x27f   :  { %411 = vmatpush.msrb.mxu2 %v1389_v8  ;;  %643 = vmatpush.msra.mxu3 %v1389_v8 }
 0x281   :  { %412 = vmatpush.msrb.mxu2 %v1401_v12  ;;  %644 = vmatpush.msra.mxu3 %v1401_v12 }
 0x28a   :  { %1181 = vmatmul.msk.f32.vlgmr.msra.gmra.mxu2 %vm70_vm0, %v140_v10 }
 0x28b   :  { %525 = vmatpush.msra.mxu2 %v1375_v4 }
 0x28d   :  { %526 = vmatpush.msra.mxu2 %v1384_v6 }
 0x28f   :  { %527 = vmatpush.msra.mxu2 %v1389_v8 }
 0x291   :  { %528 = vmatpush.msra.mxu2 %v1401_v12 }
 0x2fd   :  { %v217_v15 = vpop.f32.mrf.mxu2  ;;  %v230_v17 = vpop.f32.mrf.mxu3 }
 0x2fe   :  { %v236_v19 = vrot.slane %v230_v17, 7 }
 0x300   :  { %v238_v21 = vsel %vm237_vm4, %v217_v15, %v236_v19 }
 0x301   :  { %v240_v23 = vadd.f32 %v238_v21, %v1596_v18 }
 0x303   :  { %1226 = vtanh.f32 %v240_v23 }
 0x305   :  { %v219_v27 = vpop.f32.mrf.mxu2  ;;  %v232_v28 = vpop.f32.mrf.mxu3 }
 0x309   :  { %v1227_v30 = vpop.eup %1226 }
 0x30a   :  { %v247_v33 = vmul.f32 %v1227_v30, %v1603_v29 }
 0x30c   :  { %v253_v34 = vadd.f32 %v1606_v32, %v247_v33 }
 0x30d   :  { %v298_v35 = vpop.f32.mrf.mxu2 }
 0x30e   :  { %v301_v37 = vadd.f32 %v298_v35, %v1413_v20  ;;  %256 = vrot.lane.b32.xlu2 %v253_v34, %s1315_s7  ;;  %v254_v47 = vmul.f32 0.0, %v253_v34  ;;  %v267_v59 = vrot.slane %v253_v34, 1 }
 0x310   :  { %1228 = vtanh.f32 %v301_v37 }
 0x316   :  { %v1229_v14 = vpop.eup %1228 }
 0x317   :  { %v303_v16 = vmul.f32 %v1229_v14, %v1416_v22 }
 0x319   :  { %v304_v38 = vadd.f32 %v303_v16, %v1418_v24 }
 0x31b   :  { %307 = vrot.lane.b32.xlu2 %v304_v38, %s1314_s2  ;;  %v305_v53 = vmul.f32 %v304_v38, %v1429_v31 }
 0x368   :  { %v257_v39 = vpop.permute.xlu2 %256 }
 0x369   :  { %v258_v41 = vrot.slane %v257_v39, 1 }
 0x36b   :  { %v260_v42 = vmul.f32 %v258_v41, %v253_v34 }
 0x36d   :  { %262 = vrot.lane.b32.xlu0 %v260_v42, %s1315_s7 }
 0x375   :  { %v308_v45 = vpop.permute.xlu2 %307 }
 0x376   :  { %v310_v46 = vmul.f32 %v308_v45, %v304_v38 }
 0x378   :  { %312 = vrot.lane.b32.xlu1 %v310_v46, %s1314_s2 }
 0x3df   :  { %v263_v48 = vpop.permute.xlu0 %262 }
 0x3e0   :  { %v1617_v51 = vadd.f32 %v263_v48, %v254_v47 }
 0x3e2   :  { %1230 = vtanh.f32 %v1617_v51 }
 0x3e8   :  { %v1231_v52 = vpop.eup %1230 }
 0x3e9   :  { %270 = vrot.lane.b32.xlu2 %v1231_v52, %s1315_s7 }
 0x3ea   :  { %v313_v54 = vpop.permute.xlu1 %312 }
 0x3eb   :  { %v1622_v57 = vadd.f32 %v313_v54, %v305_v53 }
 0x3ed   :  { %1232 = vtanh.f32 %v1622_v57 }
 0x3f3   :  { %v1233_v58 = vpop.eup %1232 }
 0x3f4   :  { %318 = vrot.lane.b32.xlu0 %v1233_v58, %s1314_s2 }
 0x443   :  { %v271_v60 = vpop.permute.xlu2 %270 }
 0x444   :  { %v1626_v63 = vmul.f32 %v271_v60, %v267_v59 }
 0x446   :  { %v327_v0 = vperm.slane %v1626_v63, 0 }
 0x448   :  { %328 = vrot.lane.b32.xlu2 %v327_v0, %s1314_s2 }
 0x466   :  { %v319_v1 = vpop.permute.xlu0 %318 }
 0x467   :  { %v321_v2 = vmul.f32 %v319_v1, %v304_v38 }
 0x469   :  { %323 = vrot.lane.b32.xlu1 %v321_v2, %s1315_s7 }
 0x4a2   :  { %v329_v31 = vpop.permute.xlu2 %328 }
 0x4db   :  { %v324_v3 = vpop.permute.xlu1 %323 }
 0x4dc   :  { %v331_v7 = vsel %vm70_vm0, %v324_v3, %v329_v31  ;;  %1184 = vmatmul.msk.f32.vlgmr.msrb.gmra.mxu2 %vm70_vm0, %v324_v3 }
 0x4dd   :  { %v332_v10 = vpack.c.bf16 %v331_v7, %v331_v7  ;;  %583 = vmatpush.bf16.msrb.mxu2 %v1453_v40 }
 0x4df   :  { %1182 = vmatmul.msk.bf16.vlgmr.msrb.gmra.mxu1 %vm204_vm3, %v332_v10  ;;  %1183 = vmatmul.msk.bf16.vlgmr.msra.gmra.mxu0 %vm204_vm3, %v332_v10 }
 0x4e0   :  { %686 = vmatpush.bf16.msrb.mxu1 %v1442_v36  ;;  %699 = vmatpush.bf16.msra.mxu0 %v1453_v40 }
 0x4e1   :  { %584 = vmatpush.bf16.msrb.mxu2 %v1466_v44 }
 0x4e4   :  { %687 = vmatpush.bf16.msrb.mxu1 %v1462_v43  ;;  %700 = vmatpush.bf16.msra.mxu0 %v1466_v44 }
 0x4e5   :  { %585 = vmatpush.bf16.msrb.mxu2 %v1486_v50 }
 0x4e8   :  { %688 = vmatpush.bf16.msrb.mxu1 %v1482_v49  ;;  %701 = vmatpush.bf16.msra.mxu0 %v1486_v50 }
 0x4e9   :  { %586 = vmatpush.bf16.msrb.mxu2 %v1506_v56 }
 0x4ec   :  { %689 = vmatpush.bf16.msrb.mxu1 %v1502_v55  ;;  %702 = vmatpush.bf16.msra.mxu0 %v1506_v56 }
 0x4ed   :  { %587 = vmatpush.bf16.msrb.mxu2 %v1526_v62 }
 0x4f0   :  { %690 = vmatpush.bf16.msrb.mxu1 %v1522_v61  ;;  %703 = vmatpush.bf16.msra.mxu0 %v1526_v62 }
 0x4f1   :  { %588 = vmatpush.bf16.msrb.mxu2 %v1549_v9 }
 0x4f4   :  { %691 = vmatpush.bf16.msrb.mxu1 %v1544_v5  ;;  %704 = vmatpush.bf16.msra.mxu0 %v1549_v9 }
 0x55c   :  { %v345_v11 = vpop.f32.mrf.mxu1  ;;  %v358_v13 = vpop.f32.mrf.mxu0 }
 0x55d   :  { %v364_v15 = vrot.slane %v358_v13, 7 }
 0x55f   :  { %v365_v17 = vsel %vm237_vm4, %v345_v11, %v364_v15  ;;  %v414_v19 = vpop.f32.mrf.mxu2 }
 0x560   :  { %v367_v21 = vadd.f32 %v365_v17, %v1596_v18  ;;  %v417_v23 = vadd.f32 %v414_v19, %v1413_v20 }
 0x562   :  { %1234 = vtanh.f32 %v367_v21 }
 0x563   :  { %1236 = vtanh.f32 %v417_v23 }
 0x564   :  { %v347_v25 = vpop.f32.mrf.mxu1  ;;  %v360_v26 = vpop.f32.mrf.mxu0 }
 0x568   :  { %v1235_v27 = vpop.eup %1234 }
 0x569   :  { %v1237_v28 = vpop.eup %1236  ;;  %v369_v30 = vmul.f32 %v1235_v27, %v1603_v29 }
 0x56a   :  { %v419_v33 = vmul.f32 %v1237_v28, %v1416_v22 }
 0x56b   :  { %v370_v34 = vadd.f32 %v369_v30, %v1606_v32 }
 0x56c   :  { %v420_v35 = vadd.f32 %v419_v33, %v1418_v24 }
 0x56d   :  { %373 = vrot.lane.b32.xlu0 %v370_v34, %s1315_s7  ;;  %v371_v41 = vmul.f32 %v370_v34, %v1617_v51  ;;  %v384_v58 = vrot.slane %v370_v34, 1 }
 0x56e   :  { %423 = vrot.lane.b32.xlu1 %v420_v35, %s1314_s2  ;;  %v421_v47 = vmul.f32 %v420_v35, %v1622_v57 }
 0x5df   :  { %v374_v37 = vpop.permute.xlu0 %373 }
 0x5e0   :  { %v424_v14 = vpop.permute.xlu1 %423  ;;  %v375_v16 = vrot.slane %v374_v37, 1 }
 0x5e1   :  { %v426_v38 = vmul.f32 %v424_v14, %v420_v35 }
 0x5e2   :  { %v377_v39 = vmul.f32 %v375_v16, %v370_v34 }
 0x5e3   :  { %428 = vrot.lane.b32.xlu0 %v426_v38, %s1314_s2 }
 0x5e4   :  { %379 = vrot.lane.b32.xlu2 %v377_v39, %s1315_s7 }
 0x63e   :  { %v380_v42 = vpop.permute.xlu2 %379 }
 0x63f   :  { %v1665_v45 = vadd.f32 %v380_v42, %v371_v41 }
 0x641   :  { %1238 = vtanh.f32 %v1665_v45 }
 0x647   :  { %v1239_v46 = vpop.eup %1238 }
 0x648   :  { %387 = vrot.lane.b32.xlu1 %v1239_v46, %s1315_s7 }
 0x655   :  { %v429_v48 = vpop.permute.xlu0 %428 }
 0x656   :  { %v431_v52 = vadd.f32 %v429_v48, %v421_v47 }
 0x658   :  { %1240 = vtanh.f32 %v431_v52 }
 0x65e   :  { %v1241_v53 = vpop.eup %1240 }
 0x65f   :  { %434 = vrot.lane.b32.xlu2 %v1241_v53, %s1314_s2 }
 0x6b9   :  { %v435_v54 = vpop.permute.xlu2 %434 }
 0x6ba   :  { %v437_v59 = vmul.f32 %v435_v54, %v420_v35  ;;  %v388_v51 = vpop.permute.xlu1 %387 }
 0x6bb   :  { %v1671_v60 = vmul.f32 %v388_v51, %v384_v58 }
 0x6bc   :  { %439 = vrot.lane.b32.xlu0 %v437_v59, %s1315_s7 }
 0x6bd   :  { %v443_v0 = vperm.slane %v1671_v60, 0 }
 0x6bf   :  { %444 = vrot.lane.b32.xlu1 %v443_v0, %s1314_s2 }
 0x72e   :  { %v440_v1 = vpop.permute.xlu0 %439 }
 0x72f   :  { %1187 = vmatmul.msk.f32.vlgmr.msra.gmra.mxu2 %vm70_vm0, %v440_v1 }
 0x730   :  { %802 = vmatpush.bf16.msra.mxu2 %v1442_v36 }
 0x731   :  { %v445_v57 = vpop.permute.xlu1 %444 }
 0x732   :  { %v447_v2 = vsel %vm70_vm0, %v440_v1, %v445_v57 }
 0x733   :  { %v448_v31 = vpack.c.bf16 %v447_v2, %v447_v2 }
 0x734   :  { %803 = vmatpush.bf16.msra.mxu2 %v1462_v43 }
 0x735   :  { %1185 = vmatmul.msk.bf16.vlgmr.msrb.gmra.mxu3 %vm204_vm3, %v448_v31  ;;  %1186 = vmatmul.msk.bf16.vlgmr.msra.gmra.mxu1 %vm204_vm3, %v448_v31 }
 0x736   :  { %757 = vmatpush.msrb.mxu3 %v1375_v4  ;;  %873 = vmatpush.msra.mxu1 %v1375_v4 }
 0x738   :  { %758 = vmatpush.msrb.mxu3 %v1384_v6  ;;  %874 = vmatpush.msra.mxu1 %v1384_v6 }
 0x739   :  { %804 = vmatpush.bf16.msra.mxu2 %v1482_v49 }
 0x73a   :  { %759 = vmatpush.msrb.mxu3 %v1389_v8  ;;  %875 = vmatpush.msra.mxu1 %v1389_v8 }
 0x73c   :  { %760 = vmatpush.msrb.mxu3 %v1401_v12  ;;  %876 = vmatpush.msra.mxu1 %v1401_v12 }
 0x73d   :  { %805 = vmatpush.bf16.msra.mxu2 %v1502_v55 }
 0x741   :  { %806 = vmatpush.bf16.msra.mxu2 %v1522_v61 }
 0x745   :  { %807 = vmatpush.bf16.msra.mxu2 %v1544_v5 }
 0x7b2   :  { %v530_v3 = vpop.f32.mrf.mxu2  ;;  %v474_v7 = vpop.f32.mrf.mxu1 }
 0x7b3   :  { %v533_v10 = vadd.f32 %v530_v3, %v1413_v20  ;;  %v480_v11 = vrot.slane %v474_v7, 7 }
 0x7b5   :  { %1242 = vtanh.f32 %v533_v10 }
 0x7b8   :  { %v461_v13 = vpop.f32.mrf.mxu3 }
 0x7b9   :  { %v481_v15 = vsel %vm237_vm4, %v461_v13, %v480_v11 }
 0x7ba   :  { %v483_v17 = vadd.f32 %v481_v15, %v1596_v18  ;;  %v476_v19 = vpop.f32.mrf.mxu1 }
 0x7bb   :  { %v1243_v21 = vpop.eup %1242 }
 0x7bc   :  { %v535_v23 = vmul.f32 %v1243_v21, %v1416_v22  ;;  %1244 = vtanh.f32 %v483_v17 }
 0x7be   :  { %v536_v25 = vadd.f32 %v535_v23, %v1418_v24 }
 0x7c0   :  { %539 = vrot.lane.b32.xlu0 %v536_v25, %s1314_s2  ;;  %v463_v26 = vpop.f32.mrf.mxu3  ;;  %v537_v16 = vmul.f32 %v536_v25, %v431_v52 }
 0x7c2   :  { %v1245_v27 = vpop.eup %1244 }
 0x7c3   :  { %v485_v28 = vmul.f32 %v1245_v27, %v1603_v29 }
 0x7c5   :  { %v486_v30 = vadd.f32 %v485_v28, %v1606_v32 }
 0x7c7   :  { %489 = vrot.lane.b32.xlu2 %v486_v30, %s1315_s7  ;;  %v487_v41 = vmul.f32 %v486_v30, %v1665_v45  ;;  %v500_v54 = vrot.slane %v486_v30, 1 }
 0x821   :  { %v490_v33 = vpop.permute.xlu2 %489 }
 0x822   :  { %v491_v34 = vrot.slane %v490_v33, 1 }
 0x824   :  { %v493_v35 = vmul.f32 %v491_v34, %v486_v30 }
 0x826   :  { %495 = vrot.lane.b32.xlu1 %v493_v35, %s1315_s7 }
 0x832   :  { %v540_v37 = vpop.permute.xlu0 %539 }
 0x833   :  { %v542_v14 = vmul.f32 %v540_v37, %v536_v25 }
 0x835   :  { %544 = vrot.lane.b32.xlu2 %v542_v14, %s1314_s2 }
 0x88f   :  { %v545_v38 = vpop.permute.xlu2 %544 }
 0x890   :  { %v1705_v39 = vadd.f32 %v545_v38, %v537_v16 }
 0x892   :  { %1246 = vtanh.f32 %v1705_v39 }
 0x898   :  { %v1247_v42 = vpop.eup %1246  ;;  %v496_v46 = vpop.permute.xlu1 %495 }
 0x899   :  { %v1709_v47 = vadd.f32 %v496_v46, %v487_v41  ;;  %550 = vrot.lane.b32.xlu1 %v1247_v42, %s1314_s2 }
 0x89b   :  { %1248 = vtanh.f32 %v1709_v47 }
 0x8a1   :  { %v1249_v48 = vpop.eup %1248 }
 0x8a2   :  { %503 = vrot.lane.b32.xlu0 %v1249_v48, %s1315_s7 }
 0x90b   :  { %v551_v53 = vpop.permute.xlu1 %550 }
 0x90c   :  { %v553_v52 = vmul.f32 %v551_v53, %v536_v25 }
 0x90e   :  { %555 = vrot.lane.b32.xlu2 %v553_v52, %s1315_s7 }
 0x914   :  { %v504_v58 = vpop.permute.xlu0 %503 }
 0x915   :  { %v1715_v59 = vmul.f32 %v504_v58, %v500_v54 }
 0x917   :  { %v559_v45 = vperm.slane %v1715_v59, 0 }
 0x919   :  { %560 = vrot.lane.b32.xlu0 %v559_v45, %s1314_s2 }
 0x968   :  { %v556_v51 = vpop.permute.xlu2 %555 }
 0x969   :  { %1190 = vmatmul.msk.f32.vlgmr.msra.gmra.mxu3 %vm70_vm0, %v556_v51 }
 0x96a   :  { %815 = vmatpush.bf16.msra.mxu3 %v1453_v40 }
 0x96e   :  { %816 = vmatpush.bf16.msra.mxu3 %v1466_v44 }
 0x972   :  { %817 = vmatpush.bf16.msra.mxu3 %v1486_v50 }
 0x976   :  { %818 = vmatpush.bf16.msra.mxu3 %v1506_v56 }
 0x97a   :  { %819 = vmatpush.bf16.msra.mxu3 %v1526_v62 }
 0x97e   :  { %820 = vmatpush.bf16.msra.mxu3 %v1549_v9 }
 0x98b   :  { %v561_v0 = vpop.permute.xlu0 %560 }
 0x98c   :  { %v563_v1 = vsel %vm70_vm0, %v556_v51, %v561_v0 }
 0x98d   :  { %v564_v57 = vpack.c.bf16 %v563_v1, %v563_v1 }
 0x98f   :  { %1188 = vmatmul.msk.bf16.vlgmr.msrb.gmra.mxu0 %vm204_vm3, %v564_v57  ;;  %1189 = vmatmul.msk.bf16.vlgmr.msrb.gmra.mxu2 %vm204_vm3, %v564_v57 }
 0x990   :  { %989 = vmatpush.msrb.mxu2 %v1375_v4  ;;  %918 = vmatpush.bf16.msrb.mxu0 %v1442_v36 }
 0x992   :  { %990 = vmatpush.msrb.mxu2 %v1384_v6 }
 0x994   :  { %991 = vmatpush.msrb.mxu2 %v1389_v8  ;;  %919 = vmatpush.bf16.msrb.mxu0 %v1462_v43 }
 0x996   :  { %992 = vmatpush.msrb.mxu2 %v1401_v12 }
 0x998   :  { %920 = vmatpush.bf16.msrb.mxu0 %v1482_v49 }
 0x99c   :  { %921 = vmatpush.bf16.msrb.mxu0 %v1502_v55 }
 0x9a0   :  { %922 = vmatpush.bf16.msrb.mxu0 %v1522_v61 }
 0x9a4   :  { %923 = vmatpush.bf16.msrb.mxu0 %v1544_v5 }
 0x9ec   :  { %v646_v2 = vpop.f32.mrf.mxu3 }
 0x9ed   :  { %v649_v4 = vadd.f32 %v646_v2, %v1413_v20 }
 0x9ef   :  { %1250 = vtanh.f32 %v649_v4 }
 0x9f5   :  { %v1251_v31 = vpop.eup %1250 }
 0x9f6   :  { %v651_v6 = vmul.f32 %v1251_v31, %v1416_v22 }
 0x9f8   :  { %v652_v8 = vadd.f32 %v651_v6, %v1418_v24 }
 0x9fa   :  { %655 = vrot.lane.b32.xlu2 %v652_v8, %s1314_s2  ;;  %v653_v30 = vmul.f32 %v652_v8, %v1705_v39 }
 0xa0c   :  { %v577_v12 = vpop.f32.mrf.mxu0 }
 0xa12   :  { %v590_v3 = vpop.f32.mrf.mxu2 }
 0xa13   :  { %v596_v7 = vrot.slane %v590_v3, 7 }
 0xa14   :  { %v579_v10 = vpop.f32.mrf.mxu0 }
 0xa15   :  { %v597_v11 = vsel %vm237_vm4, %v577_v12, %v596_v7 }
 0xa16   :  { %v599_v13 = vadd.f32 %v597_v11, %v1596_v18 }
 0xa18   :  { %1252 = vtanh.f32 %v599_v13 }
 0xa1a   :  { %v592_v15 = vpop.f32.mrf.mxu2 }
 0xa1e   :  { %v1253_v17 = vpop.eup %1252 }
 0xa1f   :  { %v601_v19 = vmul.f32 %v1253_v17, %v1603_v29 }
 0xa21   :  { %v602_v21 = vadd.f32 %v601_v19, %v1606_v32 }
 0xa23   :  { %605 = vrot.lane.b32.xlu1 %v602_v21, %s1315_s7  ;;  %v603_v37 = vmul.f32 %v602_v21, %v1709_v47  ;;  %v616_v42 = vrot.slane %v602_v21, 1 }
 0xa54   :  { %v656_v23 = vpop.permute.xlu2 %655 }
 0xa55   :  { %v658_v25 = vmul.f32 %v656_v23, %v652_v8 }
 0xa57   :  { %660 = vrot.lane.b32.xlu1 %v658_v25, %s1314_s2 }
 0xa95   :  { %v606_v26 = vpop.permute.xlu1 %605 }
 0xa96   :  { %v607_v27 = vrot.slane %v606_v26, 1 }
 0xa98   :  { %v609_v28 = vmul.f32 %v607_v27, %v602_v21 }
 0xa9a   :  { %611 = vrot.lane.b32.xlu0 %v609_v28, %s1315_s7 }
 0xac9   :  { %v661_v33 = vpop.permute.xlu1 %660 }
 0xaca   :  { %v1751_v34 = vadd.f32 %v661_v33, %v653_v30 }
 0xacc   :  { %1254 = vtanh.f32 %v1751_v34 }
 0xad2   :  { %v1255_v35 = vpop.eup %1254 }
 0xad3   :  { %666 = vrot.lane.b32.xlu0 %v1255_v35, %s1314_s2 }
 0xb0c   :  { %v612_v14 = vpop.permute.xlu0 %611 }
 0xb0d   :  { %v1756_v16 = vadd.f32 %v612_v14, %v603_v37 }
 0xb0f   :  { %1256 = vtanh.f32 %v1756_v16 }
 0xb15   :  { %v1257_v38 = vpop.eup %1256 }
 0xb16   :  { %619 = vrot.lane.b32.xlu2 %v1257_v38, %s1315_s7 }
 0xb45   :  { %v667_v41 = vpop.permute.xlu0 %666 }
 0xb46   :  { %v669_v39 = vmul.f32 %v667_v41, %v652_v8 }
 0xb48   :  { %671 = vrot.lane.b32.xlu1 %v669_v39, %s1315_s7 }
 0xb70   :  { %v620_v46 = vpop.permute.xlu2 %619 }
 0xb71   :  { %v1761_v48 = vmul.f32 %v620_v46, %v616_v42 }
 0xb73   :  { %v675_v53 = vperm.slane %v1761_v48, 0 }
 0xb75   :  { %676 = vrot.lane.b32.xlu2 %v675_v53, %s1314_s2 }
 0xbba   :  { %v672_v47 = vpop.permute.xlu1 %671 }
 0xbbb   :  { %1193 = vmatmul.msk.f32.vlgmr.msrb.gmra.mxu3 %vm70_vm0, %v672_v47 }
 0xbbc   :  { %1034 = vmatpush.bf16.msrb.mxu3 %v1442_v36 }
 0xbc0   :  { %1035 = vmatpush.bf16.msrb.mxu3 %v1462_v43 }
 0xbc4   :  { %1036 = vmatpush.bf16.msrb.mxu3 %v1482_v49 }
 0xbc8   :  { %1037 = vmatpush.bf16.msrb.mxu3 %v1502_v55 }
 0xbcc   :  { %1038 = vmatpush.bf16.msrb.mxu3 %v1522_v61 }
 0xbcf   :  { %v677_v52 = vpop.permute.xlu2 %676 }
 0xbd0   :  { %v679_v54 = vsel %vm70_vm0, %v672_v47, %v677_v52  ;;  %1039 = vmatpush.bf16.msrb.mxu3 %v1544_v5 }
 0xbd1   :  { %v680_v58 = vpack.c.bf16 %v679_v54, %v679_v54 }
 0xbd3   :  { %1191 = vmatmul.msk.bf16.vlgmr.msrb.gmra.mxu1 %vm204_vm3, %v680_v58  ;;  %1192 = vmatmul.msk.bf16.vlgmr.msra.gmra.mxu0 %vm204_vm3, %v680_v58 }
 0xbd4   :  { %931 = vmatpush.bf16.msrb.mxu1 %v1453_v40  ;;  %1047 = vmatpush.bf16.msra.mxu0 %v1453_v40 }
 0xbd8   :  { %932 = vmatpush.bf16.msrb.mxu1 %v1466_v44  ;;  %1048 = vmatpush.bf16.msra.mxu0 %v1466_v44 }
 0xbdc   :  { %933 = vmatpush.bf16.msrb.mxu1 %v1486_v50  ;;  %1049 = vmatpush.bf16.msra.mxu0 %v1486_v50 }
 0xbe0   :  { %934 = vmatpush.bf16.msrb.mxu1 %v1506_v56  ;;  %1050 = vmatpush.bf16.msra.mxu0 %v1506_v56 }
 0xbe4   :  { %935 = vmatpush.bf16.msrb.mxu1 %v1526_v62  ;;  %1051 = vmatpush.bf16.msra.mxu0 %v1526_v62 }
 0xbe8   :  { %936 = vmatpush.bf16.msrb.mxu1 %v1549_v9  ;;  %1052 = vmatpush.bf16.msra.mxu0 %v1549_v9 }
 0xc3e   :  { %v762_v36 = vpop.f32.mrf.mxu3 }
 0xc3f   :  { %v765_v40 = vadd.f32 %v762_v36, %v1413_v20 }
 0xc41   :  { %1258 = vtanh.f32 %v765_v40 }
 0xc47   :  { %v1259_v43 = vpop.eup %1258 }
 0xc48   :  { %v767_v44 = vmul.f32 %v1259_v43, %v1416_v22 }
 0xc4a   :  { %v768_v49 = vadd.f32 %v767_v44, %v1418_v24 }
 0xc4c   :  { %771 = vrot.lane.b32.xlu1 %v768_v49, %s1314_s2  ;;  %v769_v12 = vmul.f32 %v768_v49, %v1751_v34 }
 0xc50   :  { %v693_v50 = vpop.f32.mrf.mxu1  ;;  %v706_v55 = vpop.f32.mrf.mxu0 }
 0xc51   :  { %v712_v56 = vrot.slane %v706_v55, 7 }
 0xc53   :  { %v713_v61 = vsel %vm237_vm4, %v693_v50, %v712_v56 }
 0xc54   :  { %v715_v62 = vadd.f32 %v713_v61, %v1596_v18 }
 0xc56   :  { %1260 = vtanh.f32 %v715_v62 }
 0xc58   :  { %v695_v5 = vpop.f32.mrf.mxu1  ;;  %v708_v9 = vpop.f32.mrf.mxu0 }
 0xc5c   :  { %v1261_v45 = vpop.eup %1260 }
 0xc5d   :  { %v717_v51 = vmul.f32 %v1261_v45, %v1603_v29 }
 0xc5f   :  { %v718_v0 = vadd.f32 %v717_v51, %v1606_v32 }
 0xc61   :  { %721 = vrot.lane.b32.xlu0 %v718_v0, %s1315_s7  ;;  %v719_v6 = vmul.f32 %v718_v0, %v1756_v16  ;;  %v732_v19 = vrot.slane %v718_v0, 1 }
 0xcbe   :  { %v772_v1 = vpop.permute.xlu1 %771 }
 0xcbf   :  { %v774_v57 = vmul.f32 %v772_v1, %v768_v49 }
 0xcc1   :  { %776 = vrot.lane.b32.xlu0 %v774_v57, %s1314_s2 }
 0xcd3   :  { %v722_v2 = vpop.permute.xlu0 %721 }
 0xcd4   :  { %v723_v4 = vrot.slane %v722_v2, 1 }
 0xcd6   :  { %v725_v31 = vmul.f32 %v723_v4, %v718_v0 }
 0xcd8   :  { %727 = vrot.lane.b32.xlu2 %v725_v31, %s1315_s7 }
 0xd32   :  { %v728_v8 = vpop.permute.xlu2 %727 }
 0xd33   :  { %v730_v3 = vadd.f32 %v728_v8, %v719_v6  ;;  %v777_v7 = vpop.permute.xlu0 %776 }
 0xd34   :  { %v779_v10 = vadd.f32 %v777_v7, %v769_v12 }
 0xd35   :  { %1262 = vtanh.f32 %v730_v3 }
 0xd36   :  { %1264 = vtanh.f32 %v779_v10 }
 0xd3b   :  { %v1263_v11 = vpop.eup %1262 }
 0xd3c   :  { %v1265_v13 = vpop.eup %1264  ;;  %735 = vrot.lane.b32.xlu1 %v1263_v11, %s1315_s7 }
 0xd3d   :  { %782 = vrot.lane.b32.xlu2 %v1265_v13, %s1314_s2 }
 0xd97   :  { %v783_v15 = vpop.permute.xlu2 %782 }
 0xd98   :  { %v785_v17 = vmul.f32 %v783_v15, %v768_v49 }
 0xd9a   :  { %787 = vrot.lane.b32.xlu0 %v785_v17, %s1315_s7 }
 0xdae   :  { %v736_v21 = vpop.permute.xlu1 %735 }
 0xdaf   :  { %v1803_v23 = vmul.f32 %v736_v21, %v732_v19 }
 0xdb1   :  { %v791_v25 = vperm.slane %v1803_v23, 0 }
 0xdb3   :  { %792 = vrot.lane.b32.xlu1 %v791_v25, %s1314_s2 }
 0xe0c   :  { %v788_v26 = vpop.permute.xlu0 %787 }
 0xe0d   :  { %1196 = vmatmul.msk.f32.vlgmr.msra.gmra.mxu1 %vm70_vm0, %v788_v26 }
 0xe25   :  { %v793_v27 = vpop.permute.xlu1 %792 }
 0xe26   :  { %v795_v28 = vsel %vm70_vm0, %v788_v26, %v793_v27 }
 0xe27   :  { %v796_v30 = vpack.c.bf16 %v795_v28, %v795_v28 }
 0xe29   :  { %1194 = vmatmul.msk.bf16.vlgmr.msra.gmra.mxu2 %vm204_vm3, %v796_v30  ;;  %1195 = vmatmul.msk.bf16.vlgmr.msra.gmra.mxu3 %vm204_vm3, %v796_v30 }
 0xe8a   :  { %v878_v33 = vpop.f32.mrf.mxu1 }
 0xe8b   :  { %v881_v34 = vadd.f32 %v878_v33, %v1413_v20 }
 0xe8d   :  { %1266 = vtanh.f32 %v881_v34 }
 0xe93   :  { %v1267_v35 = vpop.eup %1266 }
 0xe94   :  { %v883_v37 = vmul.f32 %v1267_v35, %v1416_v22 }
 0xe96   :  { %v884_v14 = vadd.f32 %v883_v37, %v1418_v24 }
 0xe98   :  { %887 = vrot.lane.b32.xlu0 %v884_v14, %s1314_s2  ;;  %v885_v49 = vmul.f32 %v884_v14, %v779_v10 }
 0xeac   :  { %v809_v16 = vpop.f32.mrf.mxu2  ;;  %v822_v38 = vpop.f32.mrf.mxu3 }
 0xead   :  { %v828_v41 = vrot.slane %v822_v38, 7 }
 0xeaf   :  { %v829_v39 = vsel %vm237_vm4, %v809_v16, %v828_v41 }
 0xeb0   :  { %v831_v42 = vadd.f32 %v829_v39, %v1596_v18 }
 0xeb2   :  { %1268 = vtanh.f32 %v831_v42 }
 0xeb4   :  { %v811_v46 = vpop.f32.mrf.mxu2  ;;  %v824_v53 = vpop.f32.mrf.mxu3 }
 0xeb8   :  { %v1269_v47 = vpop.eup %1268 }
 0xeb9   :  { %v833_v52 = vmul.f32 %v1269_v47, %v1603_v29  ;;  %v1853_v47 = vld [vmem:[%s1898_s6] sm:$0x1]  ;;  %s1317_s6 = smov [#allocation3]  }
 0xebb   :  { %v834_v54 = vadd.f32 %v833_v52, %v1606_v32  ;;  %v274_v52 = vmul.f32 %v1626_v63, %v1853_v47 }
 0xebd   :  { %837 = vrot.lane.b32.xlu2 %v834_v54, %s1315_s7  ;;  %v835_v61 = vmul.f32 %v834_v54, %v730_v3  ;;  %v848_v0 = vrot.slane %v834_v54, 1 }
 0xf0a   :  { %v888_v58 = vpop.permute.xlu0 %887 }
 0xf0b   :  { %v890_v36 = vmul.f32 %v888_v58, %v884_v14  ;;  %v739_v58 = vmul.f32 %v1803_v23, %v1853_v47  ;;  %v623_v23 = vmul.f32 %v1761_v48, %v1853_v47 }
 0xf0d   :  { %892 = vrot.lane.b32.xlu2 %v890_v36, %s1314_s2  ;;  %v740_v36 = vsel %vm275_vm5, %v739_v58, 0.0 }
 0xf17   :  { %v838_v40 = vpop.permute.xlu2 %837 }
 0xf18   :  { %v839_v43 = vrot.slane %v838_v40, 1 }
 0xf1a   :  { %v841_v44 = vmul.f32 %v839_v43, %v834_v54  ;;  %v276_v54 = vsel %vm275_vm5, %v274_v52, 0.0 }
 0xf1c   :  { %843 = vrot.lane.b32.xlu1 %v841_v44, %s1315_s7 }
 0xf67   :  { %v893_v50 = vpop.permute.xlu2 %892 }
 0xf68   :  { %v895_v55 = vadd.f32 %v893_v50, %v885_v49 }
 0xf6a   :  { %1270 = vtanh.f32 %v895_v55 }
 0xf70   :  { %v1271_v56 = vpop.eup %1270 }
 0xf71   :  { %898 = vrot.lane.b32.xlu1 %v1271_v56, %s1314_s2 }
 0xf8e   :  { %v844_v62 = vpop.permute.xlu1 %843 }
 0xf8f   :  { %v846_v5 = vadd.f32 %v844_v62, %v835_v61  ;;  %v624_v61 = vsel %vm275_vm5, %v623_v23, 0.0 }
 0xf91   :  { %1272 = vtanh.f32 %v846_v5 }
 0xf97   :  { %v1273_v9 = vpop.eup %1272 }
 0xf98   :  { %851 = vrot.lane.b32.xlu0 %v1273_v9, %s1315_s7 }
 0xfe3   :  { %v899_v45 = vpop.permute.xlu1 %898 }
 0xfe4   :  { %v901_v51 = vmul.f32 %v899_v45, %v884_v14 }
 0xfe6   :  { %903 = vrot.lane.b32.xlu2 %v901_v51, %s1315_s7 }
0x100a   :  { %v852_v1 = vpop.permute.xlu0 %851 }
0x100b   :  { %v1825_v57 = vmul.f32 %v852_v1, %v848_v0 }
0x100d   :  { %v907_v2 = vperm.slane %v1825_v57, 0 }
0x100f   :  { %908 = vrot.lane.b32.xlu0 %v907_v2, %s1314_s2 }
0x1040   :  { %v904_v4 = vpop.permute.xlu2 %903 }
0x1041   :  { %1199 = vmatmul.msk.f32.vlgmr.msrb.gmra.mxu2 %vm70_vm0, %v904_v4 }
0x1081   :  { %v909_v31 = vpop.permute.xlu0 %908 }
0x1082   :  { %v911_v6 = vsel %vm70_vm0, %v904_v4, %v909_v31 }
0x1083   :  { %v912_v8 = vpack.c.bf16 %v911_v6, %v911_v6 }
0x1085   :  { %1197 = vmatmul.msk.bf16.vlgmr.msrb.gmra.mxu0 %vm204_vm3, %v912_v8  ;;  %1198 = vmatmul.msk.bf16.vlgmr.msrb.gmra.mxu1 %vm204_vm3, %v912_v8 }
0x10c4   :  { %v994_v12 = vpop.f32.mrf.mxu2 }
0x10c5   :  { %v997_v3 = vadd.f32 %v994_v12, %v1413_v20  ;;  %v507_v12 = vmul.f32 %v1715_v59, %v1853_v47 }
0x10c7   :  { %1274 = vtanh.f32 %v997_v3  ;;  %v508_v3 = vsel %vm275_vm5, %v507_v12, 0.0 }
0x10cd   :  { %v1275_v7 = vpop.eup %1274 }
0x10ce   :  { %v999_v10 = vmul.f32 %v1275_v7, %v1416_v22  ;;  %v855_v7 = vmul.f32 %v1825_v57, %v1853_v47 }
0x10d0   :  { %v1000_v11 = vadd.f32 %v999_v10, %v1418_v24 }
0x10d2   :  { %1003 = vrot.lane.b32.xlu2 %v1000_v11, %s1314_s2  ;;  %v1001_v35 = vmul.f32 %v1000_v11, %v895_v55  ;;  %v391_v55 = vmul.f32 %v1671_v60, %v1853_v47 }
0x10d4   :  { %v392_v56 = vsel %vm275_vm5, %v391_v55, 0.0 }
0x1102   :  { %v925_v13 = vpop.f32.mrf.mxu0  ;;  %v938_v15 = vpop.f32.mrf.mxu1 }
0x1103   :  { %v944_v17 = vrot.slane %v938_v15, 7 }
0x1105   :  { %v945_v19 = vsel %vm237_vm4, %v925_v13, %v944_v17 }
0x1106   :  { %v947_v21 = vadd.f32 %v945_v19, %v1596_v18 }
0x1108   :  { %1276 = vtanh.f32 %v947_v21 }
0x110a   :  { %v927_v25 = vpop.f32.mrf.mxu0  ;;  %v940_v26 = vpop.f32.mrf.mxu1 }
0x110e   :  { %v1277_v27 = vpop.eup %1276 }
0x110f   :  { %v949_v20 = vmul.f32 %v1277_v27, %v1603_v29 }
0x1111   :  { %v950_v28 = vadd.f32 %v949_v20, %v1606_v32  ;;  %v1316_v20 = vmov 0  }
0x1112   :  { %1220 = vset.pattern.permute.xlu1 %v1316_v20  ;;  %1221 = vset.pattern.permute.xlu0 %v1316_v20 }
0x1113   :  { %953 = vrot.lane.b32.xlu1 %v950_v28, %s1315_s7  ;;  %v951_v38 = vmul.f32 %v950_v28, %v846_v5  ;;  %v964_v40 = vrot.slane %v950_v28, 1 }
0x112c   :  { %v1004_v22 = vpop.permute.xlu2 %1003 }
0x112d   :  { %v1006_v24 = vmul.f32 %v1004_v22, %v1000_v11 }
0x112f   :  { %1008 = vrot.lane.b32.xlu1 %v1006_v24, %s1314_s2 }
0x1185   :  { %v954_v30 = vpop.permute.xlu1 %953 }
0x1186   :  { %v955_v33 = vrot.slane %v954_v30, 1 }
0x1188   :  { %v957_v34 = vmul.f32 %v955_v33, %v950_v28 }
0x118a   :  { %959 = vrot.lane.b32.xlu0 %v957_v34, %s1315_s7 }
0x11a1   :  { %v1009_v37 = vpop.permute.xlu1 %1008 }
0x11a2   :  { %v1011_v14 = vadd.f32 %v1009_v37, %v1001_v35  ;;  %v51_v35 = vld [vmem:[#allocation2] sm:$0x1] }
0x11a4   :  { %1278 = vtanh.f32 %v1011_v14 }
0x11aa   :  { %v1279_v16 = vpop.eup %1278 }
0x11ab   :  { %1014 = vrot.lane.b32.xlu0 %v1279_v16, %s1314_s2 }
0x11fc   :  { %v960_v41 = vpop.permute.xlu0 %959 }
0x11fd   :  { %v1845_v39 = vadd.f32 %v960_v41, %v951_v38 }
0x11ff   :  { %1280 = vtanh.f32 %v1845_v39 }
0x1205   :  { %v1281_v42 = vpop.eup %1280 }
0x1206   :  { %967 = vrot.lane.b32.xlu2 %v1281_v42, %s1315_s7 }
0x121d   :  { %v1015_v46 = vpop.permute.xlu0 %1014 }
0x121e   :  { %v1017_v53 = vmul.f32 %v1015_v46, %v1000_v11 }
0x1220   :  { %1019 = vrot.lane.b32.xlu1 %v1017_v53, %s1315_s7 }
0x124a   :  { %277 = vadd.xlane.f32.xlu1 %v276_v54 }
0x1252   :  { %741 = vadd.xlane.f32.xlu1 %v740_v36 }
0x1260   :  { %v968_v43 = vpop.permute.xlu2 %967 }
0x1261   :  { %v970_v44 = vmul.f32 %v968_v43, %v964_v40 }
0x1263   :  { %v1023_v49 = vperm.slane %v970_v44, 0  ;;  %v971_v50 = vmul.f32 %v970_v44, %v1853_v47 }
0x1265   :  { %1024 = vrot.lane.b32.xlu2 %v1023_v49, %s1314_s2  ;;  %v972_v63 = vsel %vm275_vm5, %v971_v50, 0.0  ;;  %s1119_s2 = sshll.u32 %s1317_s6, 4  ;;  %s1120_s2 = int_to_ptr.vmem [resolvable:$true] %s1119_s2 }
0x1266   :  { %973 = vadd.xlane.f32.xlu1 %v972_v63 }
0x128e   :  { %393 = vadd.xlane.f32.xlu2 %v392_v56 }
0x1292   :  { %v1020_v62 = vpop.permute.xlu1 %1019 }
0x1296   :  { %625 = vadd.xlane.f32.xlu2 %v624_v61 }
0x12bf   :  { %v1025_v5 = vpop.permute.xlu2 %1024 }
0x12c0   :  { %v1027_v9 = vsel %vm70_vm0, %v1020_v62, %v1025_v5 }
0x12c1   :  { %v1028_v45 = vpack.c.bf16 %v1027_v9, %v1027_v9 }
0x12c3   :  { %1200 = vmatmul.msk.bf16.vlgmr.msrb.gmra.mxu3 %vm204_vm3, %v1028_v45  ;;  %1201 = vmatmul.msk.bf16.vlgmr.msra.gmra.mxu0 %vm204_vm3, %v1028_v45 }
0x1340   :  { %v1054_v51 = vpop.f32.mrf.mxu0 }
0x1341   :  { %v1060_v60 = vrot.slane %v1054_v51, 7 }
0x1346   :  { %v1041_v0 = vpop.f32.mrf.mxu3 }
0x1347   :  { %v1061_v1 = vsel %vm237_vm4, %v1041_v0, %v1060_v60 }
0x1348   :  { %v1063_v2 = vadd.f32 %v1061_v1, %v1596_v18  ;;  %v1056_v48 = vpop.f32.mrf.mxu0  ;;  %v856_v18 = vsel %vm275_vm5, %v855_v7, 0.0 }
0x134a   :  { %1282 = vtanh.f32 %v1063_v2 }
0x134e   :  { %v1043_v4 = vpop.f32.mrf.mxu3 }
0x1350   :  { %v1283_v31 = vpop.eup %1282 }
0x1351   :  { %v1065_v6 = vmul.f32 %v1283_v31, %v1603_v29  ;;  %v394_v29 = vpop.xlane.xlu2 %393 }
0x1353   :  { %v1066_v8 = vadd.f32 %v1065_v6, %v1606_v32  ;;  %v278_v32 = vpop.xlane.xlu1 %277 }
0x1354   :  { %v1092_v59 = vsel %vm1091_vm6, %v278_v32, %v394_v29 }
0x1355   :  { %1069 = vrot.lane.b32.xlu0 %v1066_v8, %s1315_s7  ;;  %v1067_v57 = vmul.f32 %v1066_v8, %v1845_v39  ;;  %v1080_v22 = vrot.slane %v1066_v8, 1 }
0x1359   :  { %v626_v17 = vpop.xlane.xlu2 %625 }
0x135b   :  { %v742_v37 = vpop.xlane.xlu1 %741 }
0x1363   :  { %v974_v14 = vpop.xlane.xlu1 %973 }
0x137f   :  { %509 = vadd.xlane.f32.xlu0 %v508_v3 }
0x1387   :  { %857 = vadd.xlane.f32.xlu0 %v856_v18 }
0x13c7   :  { %v1070_v10 = vpop.permute.xlu0 %1069 }
0x13c8   :  { %v1071_v11 = vrot.slane %v1070_v10, 1 }
0x13ca   :  { %v1073_v13 = vmul.f32 %v1071_v11, %v1066_v8 }
0x13cc   :  { %1075 = vrot.lane.b32.xlu2 %v1073_v13, %s1315_s7 }
0x13f2   :  { %v510_v15 = vpop.xlane.xlu0 %509 }
0x13f3   :  { %v1094_v19 = vsel %vm1093_vm7, %v1092_v59, %v510_v15 }
0x13f4   :  { %v1096_v21 = vsel %vm1095_vm8, %v1094_v19, %v626_v17 }
0x13f5   :  { %v1098_v38 = vsel %vm1097_vm9, %v1096_v21, %v742_v37 }
0x13fa   :  { %v858_v28 = vpop.xlane.xlu0 %857 }
0x13fb   :  { %v1100_v41 = vsel %vm1099_vm10, %v1098_v38, %v858_v28 }
0x13fc   :  { %v1102_v42 = vsel %vm1101_vm11, %v1100_v41, %v974_v14 }
0x1426   :  { %v1076_v25 = vpop.permute.xlu2 %1075 }
0x1427   :  { %v1078_v26 = vadd.f32 %v1076_v25, %v1067_v57 }
0x1429   :  { %1284 = vtanh.f32 %v1078_v26 }
0x142f   :  { %v1285_v27 = vpop.eup %1284 }
0x1430   :  { %1083 = vrot.lane.b32.xlu0 %v1285_v27, %s1315_s7 }
0x14a2   :  { %v1084_v24 = vpop.permute.xlu0 %1083 }
0x14a3   :  { %v1086_v30 = vmul.f32 %v1084_v24, %v1080_v22 }
0x14a5   :  { %v1087_v33 = vmul.f32 %v1086_v30, %v1853_v47 }
0x14a7   :  { %v1088_v34 = vsel %vm275_vm5, %v1087_v33, 0.0 }
0x14a8   :  { %1089 = vadd.xlane.f32.xlu1 %v1088_v34 }
0x14c1   :  { %1107 = vperm.xlu1 %1220, %v51_v35  }
0x151b   :  { %v1090_v16 = vpop.xlane.xlu1 %1089 }
0x151c   :  { %v1104_v53 = vsel %vm1103_vm12, %v1102_v42, %v1090_v16 }
0x1533   :  { %v1108_v39 = vpop.permute.xlu1 %1107 }
0x1534   :  { %v1110_v46 = vperm.slane %v1108_v39, 0 }
0x1536   :  { %v1111_v47 = vadd.f32 %v1110_v46, %v1104_v53 }
0x1538   :  { %1113 = vst.msk [vmem:[#allocation3] sm:$0x1] %vm1112_vm13, %v1111_v47 }
0x1539   :  { %1124 = dma.vmem_to_hbm [thread:$0]  %s1120_s2, 16, %s1122_s24, [#allocation4]  }
0x153a   :  { %1310 = dma.done.wait [#allocation4], 16  }
0x153b   :  { %1311 = vsyncadd [#allocation4], 4294967280 }
0x153c   :  { %1129 = vsyncpa [#allocation4], 1 }

</bundles_post_ra>
